<compile_context>
chip_gen: v5e
topology: v5e:2x2
jax: 0.10.0
libtpu: 0.0.40
codegen_flags: <defaults>
</compile_context>

<pallas_src>
import functools
from dataclasses import dataclass

import jax
import jax.numpy as jnp
import numpy as np
from jax.experimental import pallas as pl
from jax.experimental.pallas import tpu as pltpu


@dataclass
class ModelConfig:
    fft_conv1d_kernel: tuple = (9, 1)   # standard FastSpeech config
    fft_conv1d_padding: tuple = (4, 0)


def _round_up(x, m):
    return (x + m - 1) // m * m


def _default_vmem_limit():
    # ~3/4 of per-core VMEM: ~96 MiB on v5e/v6e (128 MiB), ~48 MiB on v7x (64 MiB/TC).
    try:
        cap = int(pltpu.get_tpu_info().vmem_capacity_bytes)
    except Exception:
        cap = 64 * 1024 * 1024
    return min((cap * 3) // 4, 100 * 1024 * 1024)


def _ffn_kernel(xc_ref, xr_ref, w1_ref, w2_ref, params_ref, o_ref, *,
                tT, K1, d_in, d_in_p, d_hid_p, eps):
    # xc_ref : (Tp, d_in_p)          compute-dtype activation, halo-padded, whole sequence
    # xr_ref : (tT, d_in_p)          residual tile in the model dtype (f32 in production)
    # w1_ref : (K1*d_in_p, d_hid_p)  conv1 weight, im2col layout (compute dtype)
    # w2_ref : (d_hid_p, d_in_p)     conv2 (1x1) weight (compute dtype)
    # params : (4, Dmax) f32         rows: b1, b2, gamma, beta
    # o_ref  : (tT, d_in_p)
    t0 = pl.multiple_of(pl.program_id(1) * tT, 8)

    # im2col operand: K1 shifted (tT, d_in_p) windows concatenated along lanes.
    cols = [xc_ref[pl.ds(t0 + k, tT), :] for k in range(K1)]
    xcol = jnp.concatenate(cols, axis=-1)                    # (tT, K1*d_in_p), compute dtype

    b1 = params_ref[0:1, :d_hid_p]                           # (1, d_hid_p) f32
    b2 = params_ref[1:2, :d_in_p]                            # (1, d_in_p)  f32
    gamma = params_ref[2:3, :d_in_p]
    beta = params_ref[3:4, :d_in_p]

    # Conv1d(k=K1) as a single matmul, f32 accumulation on the MXU.
    h = jnp.dot(xcol, w1_ref[...], preferred_element_type=jnp.float32)
    h = jnp.maximum(h + b1, 0.0)                             # bias + ReLU (f32)

    # Conv1d(k=1): operands in the compute dtype, f32 accumulation.
    y = jnp.dot(h.astype(w2_ref.dtype), w2_ref[...],
                preferred_element_type=jnp.float32) + b2     # (tT, d_in_p)

    # Exact residual add in f32 (matches the PyTorch reference numerics).
    z = y + xr_ref[...].astype(jnp.float32)

    # LayerNorm over the real d_in lanes; padded lanes of z are exactly zero,
    # so lane sums equal sums over the real channels.
    mean = jnp.sum(z, axis=-1, keepdims=True) * (1.0 / d_in)
    zc = z - mean
    if d_in_p != d_in:
        lane = jax.lax.broadcasted_iota(jnp.int32, zc.shape, 1)
        zc = jnp.where(lane < d_in, zc, 0.0)
    var = jnp.sum(zc * zc, axis=-1, keepdims=True) * (1.0 / d_in)
    zn = zc * jax.lax.rsqrt(var + eps)

    o_ref[...] = (zn * gamma + beta).astype(o_ref.dtype)


def positionwise_feed_forward(x, w1, b1, w2, b2, gamma, beta, *, padding,
                              time_tile=None, compute_dtype=None,
                              vmem_limit_bytes=None):
    """x: (B, T, d_in); w1: (K1, d_in, d_hid); w2: (d_hid, d_in).

    compute_dtype: dtype of the matmul operands. Defaults to bf16 when x is f32
    (bf16-native MXUs); accumulation, residual add and LayerNorm are always f32.
    """
    B, T, d_in = x.shape
    K1, d_in_w, d_hid = w1.shape
    assert d_in_w == d_in
    assert 2 * padding == K1 - 1, "padding/kernel combo must preserve length"
    eps = 1e-5

    if compute_dtype is None:
        cdt = jnp.bfloat16 if x.dtype == jnp.float32 else x.dtype
    else:
        cdt = compute_dtype

    # Lane-dense feature axes (multiples of 128) -> unmasked stores, dense vregs.
    d_in_p = _round_up(d_in, 128)
    d_hid_p = _round_up(d_hid, 128)
    # TODO(synk): for d_in not a multiple of 128, a densely-packed im2col K axis
    #             (round_up(K1*d_in, 128)) would avoid wasted MXU K-passes.

    # Time tiling: multiple of 128 keeps MXU M-passes full; 256-512 amortizes the
    # per-grid-step overhead; bounded so the (tT, d_hid_p) intermediate stays small.
    if time_tile is None:
        tT = max(256, min(512, _round_up(T, 128)))
    else:
        tT = _round_up(time_tile, 8)
    T_pad = _round_up(T, tT)
    nT = T_pad // tT
    Tp = T_pad + K1 - 1                       # = T_pad + 2*padding

    # Compute-dtype activation with conv halo (feeds the 9 im2col taps).
    xc = jnp.pad(x.astype(cdt),
                 ((0, 0), (padding, padding + (T_pad - T)), (0, d_in_p - d_in)))
    # Exact residual stream in the model dtype (no rounding before the residual add).
    xr = jnp.pad(x, ((0, 0), (0, T_pad - T), (0, d_in_p - d_in)))

    # Conv1 weight in im2col layout (K1*d_in_p, d_hid_p); conv2 weight (d_hid_p, d_in_p).
    w1_p = jnp.pad(w1, ((0, 0), (0, d_in_p - d_in), (0, d_hid_p - d_hid)))
    w1r = w1_p.reshape(K1 * d_in_p, d_hid_p).astype(cdt)
    w2_p = jnp.pad(w2, ((0, d_hid_p - d_hid), (0, d_in_p - d_in))).astype(cdt)

    # Pack the four small vectors into one f32 array -> one tiny DMA stream.
    Dmax = max(d_in_p, d_hid_p)
    params = jnp.zeros((4, Dmax), jnp.float32)
    params = params.at[0, :d_hid].set(b1.astype(jnp.float32))
    params = params.at[1, :d_in].set(b2.astype(jnp.float32))
    params = params.at[2, :d_in].set(gamma.astype(jnp.float32))
    params = params.at[3, :d_in].set(beta.astype(jnp.float32))

    if vmem_limit_bytes is None:
        vmem_limit_bytes = _default_vmem_limit()

    kernel = functools.partial(_ffn_kernel, tT=tT, K1=K1, d_in=d_in,
                               d_in_p=d_in_p, d_hid_p=d_hid_p, eps=eps)

    def build(single_buffer_weights):
        # Constant-index weights/params: a second pipeline buffer is pure VMEM waste.
        wkw = dict(pipeline_mode=pl.Buffered(1)) if single_buffer_weights else {}
        in_specs = [
            # Whole halo-padded sequence per batch; constant over the t axis, so it is
            # DMA'd from HBM once per batch and re-sliced in-kernel for the 9 taps.
            pl.BlockSpec((None, Tp, d_in_p), lambda b, t: (b, 0, 0)),
            # Per-tile residual stream (model dtype, pipelined normally).
            pl.BlockSpec((None, tT, d_in_p), lambda b, t: (b, t, 0)),
            pl.BlockSpec((K1 * d_in_p, d_hid_p), lambda b, t: (0, 0), **wkw),
            pl.BlockSpec((d_hid_p, d_in_p), lambda b, t: (0, 0), **wkw),
            pl.BlockSpec((4, Dmax), lambda b, t: (0, 0), **wkw),
        ]
        return pl.pallas_call(
            kernel,
            out_shape=jax.ShapeDtypeStruct((B, T_pad, d_in_p), x.dtype),
            grid_spec=pltpu.PrefetchScalarGridSpec(
                num_scalar_prefetch=0,
                grid=(B, nT),
                in_specs=in_specs,
                out_specs=pl.BlockSpec((None, tT, d_in_p), lambda b, t: (b, t, 0)),
            ),
            compiler_params=pltpu.CompilerParams(
                dimension_semantics=("parallel", "parallel"),
                vmem_limit_bytes=vmem_limit_bytes),
        )

    try:
        out = build(True)(xc, xr, w1r, w2_p, params)
    except Exception:
        # Fallback for Pallas versions without single-buffer pipeline_mode support.
        out = build(False)(xc, xr, w1r, w2_p, params)

    return out[:, :T, :d_in]


def reference_ffn(x, w1, b1, w2, b2, gamma, beta, *, padding):
    """Pure-JAX reference matching the PyTorch forward (eval mode)."""
    xt = jnp.transpose(x, (0, 2, 1))                      # (B, d_in, T)
    w1_t = jnp.transpose(w1, (2, 1, 0))                   # torch (out, in, k)
    h = jax.lax.conv_general_dilated(
        xt, w1_t, window_strides=(1,), padding=[(padding, padding)],
        dimension_numbers=("NCH", "OIH", "NCH"))
    h = jax.nn.relu(h + b1[None, :, None])
    w2_t = jnp.transpose(w2, (1, 0))[:, :, None]          # (d_in, d_hid, 1)
    y = jax.lax.conv_general_dilated(
        h, w2_t, window_strides=(1,), padding=[(0, 0)],
        dimension_numbers=("NCH", "OIH", "NCH"))
    y = y + b2[None, :, None]
    y = jnp.transpose(y, (0, 2, 1))
    z = y + x
    mean = jnp.mean(z, axis=-1, keepdims=True)
    var = jnp.mean((z - mean) ** 2, axis=-1, keepdims=True)
    return (z - mean) * jax.lax.rsqrt(var + 1e-5) * gamma + beta


if __name__ == "__main__":
    cfg = ModelConfig()
    K1, K2 = cfg.fft_conv1d_kernel
    P1, P2 = cfg.fft_conv1d_padding
    assert K2 == 1 and P2 == 0

    # Small shapes; d_in=32 / d_hid=64 exercise the lane-padding (-> 128) path.
    B, T, d_in, d_hid = 2, 24, 32, 64

    key = jax.random.PRNGKey(0)
    k1, k2, k3, k4, k5 = jax.random.split(key, 5)

    x = jax.random.normal(k1, (B, T, d_in), dtype=jnp.float32)
    # w1 stored as (K1, d_in, d_hid); torch layout would be (d_hid, d_in, K1).
    w1 = jax.random.normal(k2, (K1, d_in, d_hid), dtype=jnp.float32) * 0.05
    b1 = jax.random.normal(k3, (d_hid,), dtype=jnp.float32) * 0.05
    w2 = jax.random.normal(k4, (d_hid, d_in), dtype=jnp.float32) * 0.05
    b2 = jax.random.normal(k5, (d_in,), dtype=jnp.float32) * 0.05
    gamma = jnp.ones((d_in,), dtype=jnp.float32)
    beta = jnp.zeros((d_in,), dtype=jnp.float32)

    ref = reference_ffn(x, w1, b1, w2, b2, gamma, beta, padding=P1)

    # f32-operand path with explicit time_tile=16: exact check against the reference,
    # and exercises the multi-tile (B, nT) grid + masked-lane LayerNorm path.
    out_f32 = positionwise_feed_forward(x, w1, b1, w2, b2, gamma, beta,
                                        padding=P1, time_tile=16,
                                        compute_dtype=jnp.float32)
    out_f32 = jax.block_until_ready(out_f32)
    np.testing.assert_allclose(np.asarray(out_f32), np.asarray(ref),
                               rtol=1e-5, atol=1e-5)

    # Default production path: bf16 matmul operands, f32 residual/LayerNorm,
    # default (clamped) time tile. Loose tolerance for bf16 MXU operands.
    out = positionwise_feed_forward(x, w1, b1, w2, b2, gamma, beta, padding=P1)
    out = jax.block_until_ready(out)
    np.testing.assert_allclose(np.asarray(out), np.asarray(ref),
                               rtol=5e-2, atol=5e-2)

    print("KERNEL_OK")
</pallas_src>

<mosaic_0001>
module attributes {stable_mosaic.version = 11 : i64} {
  func.func @_ffn_kernel(%arg0: i32, %arg1: i32, %arg2: memref<1x40x128xf32, #tpu.memory_space<vmem>>, %arg3: memref<1x16x128xf32, #tpu.memory_space<vmem>>, %arg4: memref<1152x128xf32, #tpu.memory_space<vmem>>, %arg5: memref<128x128xf32, #tpu.memory_space<vmem>>, %arg6: memref<4x128xf32, #tpu.memory_space<vmem>>, %arg7: memref<1x16x128xf32, #tpu.memory_space<vmem>>) attributes {dimension_semantics = [#tpu.dimension_semantics<parallel>, #tpu.dimension_semantics<parallel>], iteration_bounds = array<i64: 2, 2>, scalar_prefetch = 0 : i64, scratch_operands = 0 : i64, tpu.core_type = #tpu.core_type<tc>, window_params = [{transform_indices = @transform_0, window_bounds = array<i64: 1, 40, 128>}, {transform_indices = @transform_1, window_bounds = array<i64: 1, 16, 128>}, {pipeline_mode = #tpu.pipeline_mode<synchronous>, transform_indices = @transform_2, window_bounds = array<i64: 1152, 128>}, {pipeline_mode = #tpu.pipeline_mode<synchronous>, transform_indices = @transform_3, window_bounds = array<i64: 128, 128>}, {pipeline_mode = #tpu.pipeline_mode<synchronous>, transform_indices = @transform_4, window_bounds = array<i64: 4, 128>}, {transform_indices = @transform_5, window_bounds = array<i64: 1, 16, 128>}]} {
    %c16_i32 = arith.constant 16 : i32
    %0 = arith.muli %arg1, %c16_i32 : i32
    %1 = tpu.assume_multiple %0, 8 : i32
    %c0_i32 = arith.constant 0 : i32
    %2 = arith.addi %1, %c0_i32 : i32
    %c0 = arith.constant 0 : index
    %3 = arith.index_cast %2 : i32 to index
    %c0_0 = arith.constant 0 : index
    %4 = vector.load %arg2[%c0, %3, %c0_0] : memref<1x40x128xf32, #tpu.memory_space<vmem>>, vector<1x16x128xf32>
    %5 = vector.shape_cast %4 : vector<1x16x128xf32> to vector<16x128xf32>
    %c1_i32 = arith.constant 1 : i32
    %6 = arith.addi %1, %c1_i32 : i32
    %c0_1 = arith.constant 0 : index
    %7 = arith.index_cast %6 : i32 to index
    %c0_2 = arith.constant 0 : index
    %8 = vector.load %arg2[%c0_1, %7, %c0_2] : memref<1x40x128xf32, #tpu.memory_space<vmem>>, vector<1x16x128xf32>
    %9 = vector.shape_cast %8 : vector<1x16x128xf32> to vector<16x128xf32>
    %c2_i32 = arith.constant 2 : i32
    %10 = arith.addi %1, %c2_i32 : i32
    %c0_3 = arith.constant 0 : index
    %11 = arith.index_cast %10 : i32 to index
    %c0_4 = arith.constant 0 : index
    %12 = vector.load %arg2[%c0_3, %11, %c0_4] : memref<1x40x128xf32, #tpu.memory_space<vmem>>, vector<1x16x128xf32>
    %13 = vector.shape_cast %12 : vector<1x16x128xf32> to vector<16x128xf32>
    %c3_i32 = arith.constant 3 : i32
    %14 = arith.addi %1, %c3_i32 : i32
    %c0_5 = arith.constant 0 : index
    %15 = arith.index_cast %14 : i32 to index
    %c0_6 = arith.constant 0 : index
    %16 = vector.load %arg2[%c0_5, %15, %c0_6] : memref<1x40x128xf32, #tpu.memory_space<vmem>>, vector<1x16x128xf32>
    %17 = vector.shape_cast %16 : vector<1x16x128xf32> to vector<16x128xf32>
    %c4_i32 = arith.constant 4 : i32
    %18 = arith.addi %1, %c4_i32 : i32
    %c0_7 = arith.constant 0 : index
    %19 = arith.index_cast %18 : i32 to index
    %c0_8 = arith.constant 0 : index
    %20 = vector.load %arg2[%c0_7, %19, %c0_8] : memref<1x40x128xf32, #tpu.memory_space<vmem>>, vector<1x16x128xf32>
    %21 = vector.shape_cast %20 : vector<1x16x128xf32> to vector<16x128xf32>
    %c5_i32 = arith.constant 5 : i32
    %22 = arith.addi %1, %c5_i32 : i32
    %c0_9 = arith.constant 0 : index
    %23 = arith.index_cast %22 : i32 to index
    %c0_10 = arith.constant 0 : index
    %24 = vector.load %arg2[%c0_9, %23, %c0_10] : memref<1x40x128xf32, #tpu.memory_space<vmem>>, vector<1x16x128xf32>
    %25 = vector.shape_cast %24 : vector<1x16x128xf32> to vector<16x128xf32>
    %c6_i32 = arith.constant 6 : i32
    %26 = arith.addi %1, %c6_i32 : i32
    %c0_11 = arith.constant 0 : index
    %27 = arith.index_cast %26 : i32 to index
    %c0_12 = arith.constant 0 : index
    %28 = vector.load %arg2[%c0_11, %27, %c0_12] : memref<1x40x128xf32, #tpu.memory_space<vmem>>, vector<1x16x128xf32>
    %29 = vector.shape_cast %28 : vector<1x16x128xf32> to vector<16x128xf32>
    %c7_i32 = arith.constant 7 : i32
    %30 = arith.addi %1, %c7_i32 : i32
    %c0_13 = arith.constant 0 : index
    %31 = arith.index_cast %30 : i32 to index
    %c0_14 = arith.constant 0 : index
    %32 = vector.load %arg2[%c0_13, %31, %c0_14] : memref<1x40x128xf32, #tpu.memory_space<vmem>>, vector<1x16x128xf32>
    %33 = vector.shape_cast %32 : vector<1x16x128xf32> to vector<16x128xf32>
    %c8_i32 = arith.constant 8 : i32
    %34 = arith.addi %1, %c8_i32 : i32
    %c0_15 = arith.constant 0 : index
    %35 = arith.index_cast %34 : i32 to index
    %c0_16 = arith.constant 0 : index
    %36 = vector.load %arg2[%c0_15, %35, %c0_16] : memref<1x40x128xf32, #tpu.memory_space<vmem>>, vector<1x16x128xf32>
    %37 = vector.shape_cast %36 : vector<1x16x128xf32> to vector<16x128xf32>
    %38 = tpu.concatenate %5, %9, %13, %17, %21, %25, %29, %33, %37 in 1 : vector<16x128xf32>, vector<16x128xf32>, vector<16x128xf32>, vector<16x128xf32>, vector<16x128xf32>, vector<16x128xf32>, vector<16x128xf32>, vector<16x128xf32>, vector<16x128xf32> -> vector<16x1152xf32>
    %c0_17 = arith.constant 0 : index
    %c0_18 = arith.constant 0 : index
    %39 = vector.load %arg6[%c0_17, %c0_18] : memref<4x128xf32, #tpu.memory_space<vmem>>, vector<1x128xf32>
    %c1 = arith.constant 1 : index
    %c0_19 = arith.constant 0 : index
    %40 = vector.load %arg6[%c1, %c0_19] : memref<4x128xf32, #tpu.memory_space<vmem>>, vector<1x128xf32>
    %c2 = arith.constant 2 : index
    %c0_20 = arith.constant 0 : index
    %41 = vector.load %arg6[%c2, %c0_20] : memref<4x128xf32, #tpu.memory_space<vmem>>, vector<1x128xf32>
    %c3 = arith.constant 3 : index
    %c0_21 = arith.constant 0 : index
    %42 = vector.load %arg6[%c3, %c0_21] : memref<4x128xf32, #tpu.memory_space<vmem>>, vector<1x128xf32>
    %c0_22 = arith.constant 0 : index
    %c0_23 = arith.constant 0 : index
    %43 = vector.load %arg4[%c0_22, %c0_23] : memref<1152x128xf32, #tpu.memory_space<vmem>>, vector<1152x128xf32>
    %cst = arith.constant dense<0.000000e+00> : vector<16x128xf32>
    %44 = tpu.matmul %38, %43, %cst {dimension_numbers = #tpu.dot_dimension_numbers<[1], [0], [0], [1], [0, 0, 1, 1], [], []>} : vector<16x1152xf32>, vector<1152x128xf32>, vector<16x128xf32> -> vector<16x128xf32>
    %45 = vector.broadcast %39 : vector<1x128xf32> to vector<16x128xf32>
    %46 = arith.addf %44, %45 : vector<16x128xf32>
    %cst_24 = arith.constant 0.000000e+00 : f32
    %47 = vector.broadcast %cst_24 : f32 to vector<16x128xf32>
    %48 = arith.maximumf %46, %47 : vector<16x128xf32>
    %c0_25 = arith.constant 0 : index
    %c0_26 = arith.constant 0 : index
    %49 = vector.load %arg5[%c0_25, %c0_26] : memref<128x128xf32, #tpu.memory_space<vmem>>, vector<128x128xf32>
    %cst_27 = arith.constant dense<0.000000e+00> : vector<16x128xf32>
    %50 = tpu.matmul %48, %49, %cst_27 {dimension_numbers = #tpu.dot_dimension_numbers<[1], [0], [0], [1], [0, 0, 1, 1], [], []>} : vector<16x128xf32>, vector<128x128xf32>, vector<16x128xf32> -> vector<16x128xf32>
    %51 = vector.broadcast %40 : vector<1x128xf32> to vector<16x128xf32>
    %52 = arith.addf %50, %51 : vector<16x128xf32>
    %c0_28 = arith.constant 0 : index
    %c0_29 = arith.constant 0 : index
    %c0_30 = arith.constant 0 : index
    %53 = vector.load %arg3[%c0_28, %c0_29, %c0_30] : memref<1x16x128xf32, #tpu.memory_space<vmem>>, vector<1x16x128xf32>
    %54 = vector.shape_cast %53 : vector<1x16x128xf32> to vector<16x128xf32>
    %55 = arith.addf %52, %54 : vector<16x128xf32>
    %cst_31 = arith.constant dense<0.000000e+00> : vector<16xf32>
    %56 = vector.multi_reduction <add>, %55, %cst_31 [1] : vector<16x128xf32> to vector<16xf32>
    %57 = vector.shape_cast %56 : vector<16xf32> to vector<16x1xf32>
    %cst_32 = arith.constant 3.125000e-02 : f32
    %58 = vector.broadcast %cst_32 : f32 to vector<16x1xf32>
    %59 = arith.mulf %57, %58 : vector<16x1xf32>
    %60 = vector.broadcast %59 : vector<16x1xf32> to vector<16x128xf32>
    %61 = arith.subf %55, %60 : vector<16x128xf32>
    %62 = tpu.iota {dimensions = array<i32: 1>} : vector<16x128xi32>
    %c32_i32 = arith.constant 32 : i32
    %63 = vector.broadcast %c32_i32 : i32 to vector<16x128xi32>
    %64 = arith.cmpi slt, %62, %63 : vector<16x128xi32>
    %cst_33 = arith.constant 0.000000e+00 : f32
    %65 = vector.broadcast %cst_33 : f32 to vector<16x128xf32>
    %66 = arith.select %64, %61, %65 : vector<16x128xi1>, vector<16x128xf32>
    %67 = arith.mulf %66, %66 : vector<16x128xf32>
    %cst_34 = arith.constant dense<0.000000e+00> : vector<16xf32>
    %68 = vector.multi_reduction <add>, %67, %cst_34 [1] : vector<16x128xf32> to vector<16xf32>
    %69 = vector.shape_cast %68 : vector<16xf32> to vector<16x1xf32>
    %cst_35 = arith.constant 3.125000e-02 : f32
    %70 = vector.broadcast %cst_35 : f32 to vector<16x1xf32>
    %71 = arith.mulf %69, %70 : vector<16x1xf32>
    %cst_36 = arith.constant 9.99999974E-6 : f32
    %72 = vector.broadcast %cst_36 : f32 to vector<16x1xf32>
    %73 = arith.addf %71, %72 : vector<16x1xf32>
    %74 = math.rsqrt %73 : vector<16x1xf32>
    %75 = vector.broadcast %74 : vector<16x1xf32> to vector<16x128xf32>
    %76 = arith.mulf %66, %75 : vector<16x128xf32>
    %77 = vector.broadcast %41 : vector<1x128xf32> to vector<16x128xf32>
    %78 = arith.mulf %76, %77 : vector<16x128xf32>
    %79 = vector.broadcast %42 : vector<1x128xf32> to vector<16x128xf32>
    %80 = arith.addf %78, %79 : vector<16x128xf32>
    %c0_37 = arith.constant 0 : index
    %c0_38 = arith.constant 0 : index
    %c0_39 = arith.constant 0 : index
    %81 = vector.load %arg7[%c0_37, %c0_38, %c0_39] : memref<1x16x128xf32, #tpu.memory_space<vmem>>, vector<1x16x128xf32>
    %82 = vector.shape_cast %81 : vector<1x16x128xf32> to vector<16x128xf32>
    %83 = vector.shape_cast %80 : vector<16x128xf32> to vector<1x16x128xf32>
    tpu.vector_store %arg7[%c0_37, %c0_38, %c0_39], %83 {strides = array<i32>} : memref<1x16x128xf32, #tpu.memory_space<vmem>>, vector<1x16x128xf32>,
    return
  }
  func.func @transform_0(%arg0: i32, %arg1: i32) -> (i32, i32, i32) {
    %c0_i32 = arith.constant 0 : i32
    %c0_i32_0 = arith.constant 0 : i32
    %c0_i32_1 = arith.constant 0 : i32
    return %arg0, %c0_i32, %c0_i32_0 : i32, i32, i32
  }
  func.func @transform_1(%arg0: i32, %arg1: i32) -> (i32, i32, i32) {
    %c0_i32 = arith.constant 0 : i32
    %c0_i32_0 = arith.constant 0 : i32
    return %arg0, %arg1, %c0_i32 : i32, i32, i32
  }
  func.func @transform_2(%arg0: i32, %arg1: i32) -> (i32, i32) {
    %c0_i32 = arith.constant 0 : i32
    %c0_i32_0 = arith.constant 0 : i32
    %c0_i32_1 = arith.constant 0 : i32
    return %c0_i32, %c0_i32_0 : i32, i32
  }
  func.func @transform_3(%arg0: i32, %arg1: i32) -> (i32, i32) {
    %c0_i32 = arith.constant 0 : i32
    %c0_i32_0 = arith.constant 0 : i32
    %c0_i32_1 = arith.constant 0 : i32
    return %c0_i32, %c0_i32_0 : i32, i32
  }
  func.func @transform_4(%arg0: i32, %arg1: i32) -> (i32, i32) {
    %c0_i32 = arith.constant 0 : i32
    %c0_i32_0 = arith.constant 0 : i32
    %c0_i32_1 = arith.constant 0 : i32
    return %c0_i32, %c0_i32_0 : i32, i32
  }
  func.func @transform_5(%arg0: i32, %arg1: i32) -> (i32, i32, i32) {
    %c0_i32 = arith.constant 0 : i32
    %c0_i32_0 = arith.constant 0 : i32
    return %arg0, %arg1, %c0_i32 : i32, i32, i32
  }
}

module attributes {stable_mosaic.version = 11 : i64} {
  func.func @_ffn_kernel(%arg0: i32, %arg1: i32, %arg2: memref<1x40x128xf32, #tpu.memory_space<vmem>>, %arg3: memref<1x16x128xf32, #tpu.memory_space<vmem>>, %arg4: memref<1152x128xf32, #tpu.memory_space<vmem>>, %arg5: memref<128x128xf32, #tpu.memory_space<vmem>>, %arg6: memref<4x128xf32, #tpu.memory_space<vmem>>, %arg7: memref<1x16x128xf32, #tpu.memory_space<vmem>>) attributes {dimension_semantics = [#tpu.dimension_semantics<parallel>, #tpu.dimension_semantics<parallel>], iteration_bounds = array<i64: 2, 2>, scalar_prefetch = 0 : i64, scratch_operands = 0 : i64, tpu.core_type = #tpu.core_type<tc>, window_params = [{transform_indices = @transform_0, window_bounds = array<i64: 1, 40, 128>}, {transform_indices = @transform_1, window_bounds = array<i64: 1, 16, 128>}, {pipeline_mode = #tpu.pipeline_mode<synchronous>, transform_indices = @transform_2, window_bounds = array<i64: 1152, 128>}, {pipeline_mode = #tpu.pipeline_mode<synchronous>, transform_indices = @transform_3, window_bounds = array<i64: 128, 128>}, {pipeline_mode = #tpu.pipeline_mode<synchronous>, transform_indices = @transform_4, window_bounds = array<i64: 4, 128>}, {transform_indices = @transform_5, window_bounds = array<i64: 1, 16, 128>}]} {
    %c16_i32 = arith.constant 16 : i32
    %0 = arith.muli %arg1, %c16_i32 : i32
    %1 = tpu.assume_multiple %0, 8 : i32
    %c0_i32 = arith.constant 0 : i32
    %2 = arith.addi %1, %c0_i32 : i32
    %c0 = arith.constant 0 : index
    %3 = arith.index_cast %2 : i32 to index
    %c0_0 = arith.constant 0 : index
    %4 = vector.load %arg2[%c0, %3, %c0_0] : memref<1x40x128xf32, #tpu.memory_space<vmem>>, vector<1x16x128xf32>
    %5 = vector.shape_cast %4 : vector<1x16x128xf32> to vector<16x128xf32>
    %c1_i32 = arith.constant 1 : i32
    %6 = arith.addi %1, %c1_i32 : i32
    %c0_1 = arith.constant 0 : index
    %7 = arith.index_cast %6 : i32 to index
    %c0_2 = arith.constant 0 : index
    %8 = vector.load %arg2[%c0_1, %7, %c0_2] : memref<1x40x128xf32, #tpu.memory_space<vmem>>, vector<1x16x128xf32>
    %9 = vector.shape_cast %8 : vector<1x16x128xf32> to vector<16x128xf32>
    %c2_i32 = arith.constant 2 : i32
    %10 = arith.addi %1, %c2_i32 : i32
    %c0_3 = arith.constant 0 : index
    %11 = arith.index_cast %10 : i32 to index
    %c0_4 = arith.constant 0 : index
    %12 = vector.load %arg2[%c0_3, %11, %c0_4] : memref<1x40x128xf32, #tpu.memory_space<vmem>>, vector<1x16x128xf32>
    %13 = vector.shape_cast %12 : vector<1x16x128xf32> to vector<16x128xf32>
    %c3_i32 = arith.constant 3 : i32
    %14 = arith.addi %1, %c3_i32 : i32
    %c0_5 = arith.constant 0 : index
    %15 = arith.index_cast %14 : i32 to index
    %c0_6 = arith.constant 0 : index
    %16 = vector.load %arg2[%c0_5, %15, %c0_6] : memref<1x40x128xf32, #tpu.memory_space<vmem>>, vector<1x16x128xf32>
    %17 = vector.shape_cast %16 : vector<1x16x128xf32> to vector<16x128xf32>
    %c4_i32 = arith.constant 4 : i32
    %18 = arith.addi %1, %c4_i32 : i32
    %c0_7 = arith.constant 0 : index
    %19 = arith.index_cast %18 : i32 to index
    %c0_8 = arith.constant 0 : index
    %20 = vector.load %arg2[%c0_7, %19, %c0_8] : memref<1x40x128xf32, #tpu.memory_space<vmem>>, vector<1x16x128xf32>
    %21 = vector.shape_cast %20 : vector<1x16x128xf32> to vector<16x128xf32>
    %c5_i32 = arith.constant 5 : i32
    %22 = arith.addi %1, %c5_i32 : i32
    %c0_9 = arith.constant 0 : index
    %23 = arith.index_cast %22 : i32 to index
    %c0_10 = arith.constant 0 : index
    %24 = vector.load %arg2[%c0_9, %23, %c0_10] : memref<1x40x128xf32, #tpu.memory_space<vmem>>, vector<1x16x128xf32>
    %25 = vector.shape_cast %24 : vector<1x16x128xf32> to vector<16x128xf32>
    %c6_i32 = arith.constant 6 : i32
    %26 = arith.addi %1, %c6_i32 : i32
    %c0_11 = arith.constant 0 : index
    %27 = arith.index_cast %26 : i32 to index
    %c0_12 = arith.constant 0 : index
    %28 = vector.load %arg2[%c0_11, %27, %c0_12] : memref<1x40x128xf32, #tpu.memory_space<vmem>>, vector<1x16x128xf32>
    %29 = vector.shape_cast %28 : vector<1x16x128xf32> to vector<16x128xf32>
    %c7_i32 = arith.constant 7 : i32
    %30 = arith.addi %1, %c7_i32 : i32
    %c0_13 = arith.constant 0 : index
    %31 = arith.index_cast %30 : i32 to index
    %c0_14 = arith.constant 0 : index
    %32 = vector.load %arg2[%c0_13, %31, %c0_14] : memref<1x40x128xf32, #tpu.memory_space<vmem>>, vector<1x16x128xf32>
    %33 = vector.shape_cast %32 : vector<1x16x128xf32> to vector<16x128xf32>
    %c8_i32 = arith.constant 8 : i32
    %34 = arith.addi %1, %c8_i32 : i32
    %c0_15 = arith.constant 0 : index
    %35 = arith.index_cast %34 : i32 to index
    %c0_16 = arith.constant 0 : index
    %36 = vector.load %arg2[%c0_15, %35, %c0_16] : memref<1x40x128xf32, #tpu.memory_space<vmem>>, vector<1x16x128xf32>
    %37 = vector.shape_cast %36 : vector<1x16x128xf32> to vector<16x128xf32>
    %38 = tpu.concatenate %5, %9, %13, %17, %21, %25, %29, %33, %37 in 1 : vector<16x128xf32>, vector<16x128xf32>, vector<16x128xf32>, vector<16x128xf32>, vector<16x128xf32>, vector<16x128xf32>, vector<16x128xf32>, vector<16x128xf32>, vector<16x128xf32> -> vector<16x1152xf32>
    %c0_17 = arith.constant 0 : index
    %c0_18 = arith.constant 0 : index
    %39 = vector.load %arg6[%c0_17, %c0_18] : memref<4x128xf32, #tpu.memory_space<vmem>>, vector<1x128xf32>
    %c1 = arith.constant 1 : index
    %c0_19 = arith.constant 0 : index
    %40 = vector.load %arg6[%c1, %c0_19] : memref<4x128xf32, #tpu.memory_space<vmem>>, vector<1x128xf32>
    %c2 = arith.constant 2 : index
    %c0_20 = arith.constant 0 : index
    %41 = vector.load %arg6[%c2, %c0_20] : memref<4x128xf32, #tpu.memory_space<vmem>>, vector<1x128xf32>
    %c3 = arith.constant 3 : index
    %c0_21 = arith.constant 0 : index
    %42 = vector.load %arg6[%c3, %c0_21] : memref<4x128xf32, #tpu.memory_space<vmem>>, vector<1x128xf32>
    %c0_22 = arith.constant 0 : index
    %c0_23 = arith.constant 0 : index
    %43 = vector.load %arg4[%c0_22, %c0_23] : memref<1152x128xf32, #tpu.memory_space<vmem>>, vector<1152x128xf32>
    %cst = arith.constant dense<0.000000e+00> : vector<16x128xf32>
    %44 = tpu.matmul %38, %43, %cst {dimension_numbers = #tpu.dot_dimension_numbers<[1], [0], [0], [1], [0, 0, 1, 1], [], []>} : vector<16x1152xf32>, vector<1152x128xf32>, vector<16x128xf32> -> vector<16x128xf32>
    %45 = vector.broadcast %39 : vector<1x128xf32> to vector<16x128xf32>
    %46 = arith.addf %44, %45 : vector<16x128xf32>
    %cst_24 = arith.constant 0.000000e+00 : f32
    %47 = vector.broadcast %cst_24 : f32 to vector<16x128xf32>
    %48 = arith.maximumf %46, %47 : vector<16x128xf32>
    %c0_25 = arith.constant 0 : index
    %c0_26 = arith.constant 0 : index
    %49 = vector.load %arg5[%c0_25, %c0_26] : memref<128x128xf32, #tpu.memory_space<vmem>>, vector<128x128xf32>
    %cst_27 = arith.constant dense<0.000000e+00> : vector<16x128xf32>
    %50 = tpu.matmul %48, %49, %cst_27 {dimension_numbers = #tpu.dot_dimension_numbers<[1], [0], [0], [1], [0, 0, 1, 1], [], []>} : vector<16x128xf32>, vector<128x128xf32>, vector<16x128xf32> -> vector<16x128xf32>
    %51 = vector.broadcast %40 : vector<1x128xf32> to vector<16x128xf32>
    %52 = arith.addf %50, %51 : vector<16x128xf32>
    %c0_28 = arith.constant 0 : index
    %c0_29 = arith.constant 0 : index
    %c0_30 = arith.constant 0 : index
    %53 = vector.load %arg3[%c0_28, %c0_29, %c0_30] : memref<1x16x128xf32, #tpu.memory_space<vmem>>, vector<1x16x128xf32>
    %54 = vector.shape_cast %53 : vector<1x16x128xf32> to vector<16x128xf32>
    %55 = arith.addf %52, %54 : vector<16x128xf32>
    %cst_31 = arith.constant dense<0.000000e+00> : vector<16xf32>
    %56 = vector.multi_reduction <add>, %55, %cst_31 [1] : vector<16x128xf32> to vector<16xf32>
    %57 = vector.shape_cast %56 : vector<16xf32> to vector<16x1xf32>
    %cst_32 = arith.constant 3.125000e-02 : f32
    %58 = vector.broadcast %cst_32 : f32 to vector<16x1xf32>
    %59 = arith.mulf %57, %58 : vector<16x1xf32>
    %60 = vector.broadcast %59 : vector<16x1xf32> to vector<16x128xf32>
    %61 = arith.subf %55, %60 : vector<16x128xf32>
    %62 = tpu.iota {dimensions = array<i32: 1>} : vector<16x128xi32>
    %c32_i32 = arith.constant 32 : i32
    %63 = vector.broadcast %c32_i32 : i32 to vector<16x128xi32>
    %64 = arith.cmpi slt, %62, %63 : vector<16x128xi32>
    %cst_33 = arith.constant 0.000000e+00 : f32
    %65 = vector.broadcast %cst_33 : f32 to vector<16x128xf32>
    %66 = arith.select %64, %61, %65 : vector<16x128xi1>, vector<16x128xf32>
    %67 = arith.mulf %66, %66 : vector<16x128xf32>
    %cst_34 = arith.constant dense<0.000000e+00> : vector<16xf32>
    %68 = vector.multi_reduction <add>, %67, %cst_34 [1] : vector<16x128xf32> to vector<16xf32>
    %69 = vector.shape_cast %68 : vector<16xf32> to vector<16x1xf32>
    %cst_35 = arith.constant 3.125000e-02 : f32
    %70 = vector.broadcast %cst_35 : f32 to vector<16x1xf32>
    %71 = arith.mulf %69, %70 : vector<16x1xf32>
    %cst_36 = arith.constant 9.99999974E-6 : f32
    %72 = vector.broadcast %cst_36 : f32 to vector<16x1xf32>
    %73 = arith.addf %71, %72 : vector<16x1xf32>
    %74 = math.rsqrt %73 : vector<16x1xf32>
    %75 = vector.broadcast %74 : vector<16x1xf32> to vector<16x128xf32>
    %76 = arith.mulf %66, %75 : vector<16x128xf32>
    %77 = vector.broadcast %41 : vector<1x128xf32> to vector<16x128xf32>
    %78 = arith.mulf %76, %77 : vector<16x128xf32>
    %79 = vector.broadcast %42 : vector<1x128xf32> to vector<16x128xf32>
    %80 = arith.addf %78, %79 : vector<16x128xf32>
    %c0_37 = arith.constant 0 : index
    %c0_38 = arith.constant 0 : index
    %c0_39 = arith.constant 0 : index
    %81 = vector.load %arg7[%c0_37, %c0_38, %c0_39] : memref<1x16x128xf32, #tpu.memory_space<vmem>>, vector<1x16x128xf32>
    %82 = vector.shape_cast %81 : vector<1x16x128xf32> to vector<16x128xf32>
    %83 = vector.shape_cast %80 : vector<16x128xf32> to vector<1x16x128xf32>
    tpu.vector_store %arg7[%c0_37, %c0_38, %c0_39], %83 {strides = array<i32>} : memref<1x16x128xf32, #tpu.memory_space<vmem>>, vector<1x16x128xf32>,
    return
  }
  func.func @transform_0(%arg0: i32, %arg1: i32) -> (i32, i32, i32) {
    %c0_i32 = arith.constant 0 : i32
    %c0_i32_0 = arith.constant 0 : i32
    %c0_i32_1 = arith.constant 0 : i32
    return %arg0, %c0_i32, %c0_i32_0 : i32, i32, i32
  }
  func.func @transform_1(%arg0: i32, %arg1: i32) -> (i32, i32, i32) {
    %c0_i32 = arith.constant 0 : i32
    %c0_i32_0 = arith.constant 0 : i32
    return %arg0, %arg1, %c0_i32 : i32, i32, i32
  }
  func.func @transform_2(%arg0: i32, %arg1: i32) -> (i32, i32) {
    %c0_i32 = arith.constant 0 : i32
    %c0_i32_0 = arith.constant 0 : i32
    %c0_i32_1 = arith.constant 0 : i32
    return %c0_i32, %c0_i32_0 : i32, i32
  }
  func.func @transform_3(%arg0: i32, %arg1: i32) -> (i32, i32) {
    %c0_i32 = arith.constant 0 : i32
    %c0_i32_0 = arith.constant 0 : i32
    %c0_i32_1 = arith.constant 0 : i32
    return %c0_i32, %c0_i32_0 : i32, i32
  }
  func.func @transform_4(%arg0: i32, %arg1: i32) -> (i32, i32) {
    %c0_i32 = arith.constant 0 : i32
    %c0_i32_0 = arith.constant 0 : i32
    %c0_i32_1 = arith.constant 0 : i32
    return %c0_i32, %c0_i32_0 : i32, i32
  }
  func.func @transform_5(%arg0: i32, %arg1: i32) -> (i32, i32, i32) {
    %c0_i32 = arith.constant 0 : i32
    %c0_i32_0 = arith.constant 0 : i32
    return %arg0, %arg1, %c0_i32 : i32, i32, i32
  }
}

</mosaic_0001>

<bundles_post_ra>
// kernel: tpu_custom_call.1
= control target key start
LH: loop header
LB: loop body
LE: loop exit
PB: predicated region body
PF: predicated region fallthrough
CT: control target
= control target key end

     0   :  { %s1882_s0 = inlined_call_operand.hbm [shape: f32[2,40,128], index: 0, kind: input, shape index: {}]   ;;  %s1883_s1 = inlined_call_operand.hbm [shape: f32[2,32,128], index: 1, kind: input, shape index: {}]   ;;  %s1884_s2 = inlined_call_operand.hbm [shape: f32[1152,128], index: 2, kind: input, shape index: {}]   ;;  %s1885_s3 = inlined_call_operand.hbm [shape: f32[128,128], index: 3, kind: input, shape index: {}]   ;;  %s1886_s4 = inlined_call_operand.hbm [shape: f32[4,128], index: 4, kind: input, shape index: {}]   ;;  %s1887_s5 = inlined_call_operand.hbm [shape: f32[2,32,128], index: 5, kind: output, shape index: {}]  }
   0x1   :  { %1903 = sst [smem:[#allocation26_spill]] %s1882_s0 }
   0x2   :  { %1904 = sst [smem:[#allocation27_spill]] %s1884_s2 }
   0x3   :  { %1905 = sst [smem:[#allocation28_spill]] %s1885_s3 }
   0x4   :  { %1906 = sst [smem:[#allocation29_spill]] %s1886_s4 }
   0x5   :  { %1907 = sst [smem:[#allocation30_spill]] %s1887_s5 }
   0x6   :  { %10 = vsyncpa [#allocation3], 0 }
   0x7   :  { %12 = vsyncpa [#allocation3 + $0x1], 0 }
   0x8   :  { %13 = vsyncpa [#allocation6], 0 }
   0x9   :  { %15 = vsyncpa [#allocation6 + $0x1], 0 }
   0xa   :  { %16 = vsyncpa [#allocation9], 0 }
   0xb   :  { %17 = vsyncpa [#allocation4], 0 }
   0xc   :  { %19 = vsyncpa [#allocation4 + $0x1], 0  ;;  %s1587_s18 = smov 0   ;;  %s1589_s19 = smov 0  }
   0xd   :  { %s1591_s20 = smov 0   ;;  %s1593_s21 = smov 0  }
   0xe   :  { %s1595_s22 = smov 0   ;;  %s1597_s23 = smov 0  }
   0xf   :  { %s1599_s24 = smov 0   ;;  %s1601_s25 = smov 0  }
  0x10   :  { %s1603_s26 = smov 0   ;;  %s1605_s27 = smov 0  }
  0x11   :  { %s1607_s28 = smov 0  }
  0x12 LB: > { %1908 = sst [smem:[#allocation17_spill]] %s1508_s18  ;;  %s1643_s29 = sadd.s32 4294967295, %s1548_s28   ;;  %s1548_s28 = sphi %s1607_s28, %s25_s28   ;;  %s1544_s27 = sphi %s1605_s27, %s1951_s27   ;;  %s1540_s26 = sphi %s1603_s26, %s1943_s26   ;;  %s1536_s25 = sphi %s1601_s25, %s1950_s25   ;;  %s1532_s24 = sphi %s1599_s24, %s1942_s24   ;;  %s1528_s23 = sphi %s1597_s23, %s1949_s23   ;;  %s1524_s22 = sphi %s1595_s22, %s1948_s22   ;;  %s1520_s21 = sphi %s1593_s21, %s1947_s21   ;;  %s1516_s20 = sphi %s1591_s20, %s1946_s20   ;;  %s1512_s19 = sphi %s1589_s19, %s1945_s19   ;;  %s1508_s18 = sphi %s1587_s18, %s1944_s18  }
  0x13   : > { %1909 = sst [smem:[#allocation18_spill]] %s1512_s19  ;;  %s1031_s30 = sadd.s32 4294967294, %s1548_s28  }
  0x14   : > { %1910 = sst [smem:[#allocation19_spill]] %s1532_s24  ;;  %p58_p0 = scmp.eq.s32.totalorder %s1643_s29, 0 }
  0x15   : > { %1911 = sst [smem:[#allocation20_spill]] %s1536_s25  ;;  %p85_p1 = scmp.ne.s32.totalorder %s1512_s19, %s1508_s18 }
  0x16   : > { %1912 = sst [smem:[#allocation21_spill]] %s1540_s26  ;;  %p174_p2 = scmp.eq.s32.totalorder %s1643_s29, 3 }
  0x17   : > { %p180_p3 = scmp.eq.s32.totalorder %s1031_s30, 3  ;;  %p1652_p4 = por %p85_p1, %p58_p0 }
  0x18   : > { %p1032_p5 = scmp.ge.s32.totalorder %s1548_s28, 1  ;;  %p187_p7 = scmp.lt.s32.totalorder %s1548_s28, 5 }
  0x19   : > { %s1913_s6 = scalar_select %p1652_p4, 1, 0 }
  0x1a   : > { %p1657_p6 = por %p180_p3, %p85_p1  ;;  %s1917_s2 = sld [smem:[#allocation27_spill]] }
  0x1b   : > { %1914 = sst [smem:[#allocation22_spill]] %s1913_s6  ;;  %p1665_p8 = pnand %p1032_p5, %p187_p7 }
  0x1c   : > { %s1915_s7 = scalar_select %p1657_p6, 1, 0 }
  0x1d   : > { %p1132_p9 = pneg %p1665_p8  ;;  %s1550_s12 = smov [#allocation7]  }
  0x1e   : > { %1916 = sst [smem:[#allocation23_spill]] %s1915_s7  ;;  %s200_s13 = sshll.u32 %s1550_s12, 4  ;;  %s201_s13 = int_to_ptr.vmem [resolvable:$true] %s200_s13 }
  0x1f   : > { %p1673_p10 = pnand %p1132_p9, %p58_p0  ;;  %s1920_s3 = sld [smem:[#allocation28_spill]] }
  0x20   : > { %s198_s10 = sshll.u32 %s1917_s2, 4  ;;  %s1888_s30 = smov 128   ;;  %s199_s10 = int_to_ptr.hbm [resolvable:$true] %s198_s10 }
  0x21   : > { %s1892_s8 = smov 8   ;;  %s1553_s9 = smov [#allocation8]  }
  0x22   : > { %1135 = dma.hbm_to_vmem [thread:$0]  (!%p1673_p10), %s199_s10, 18432, %s201_s13, [#allocation6], %s1888_s30, %s1888_s30, %s1892_s8  }
  0x23   : > { %s214_s12 = sshll.u32 %s1553_s9, 4  ;;  %s1921_s4 = sld [smem:[#allocation29_spill]]  ;;  %s215_s12 = int_to_ptr.vmem [resolvable:$true] %s214_s12 }
  0x24   : > { %s1554_s10 = smov [#allocation10]   ;;  %s37_s9 = sadd.s32 1, %s1544_s27 }
  0x25   : > { %s212_s17 = sshll.u32 %s1920_s3, 4  ;;  %s229_s13 = sshll.u32 %s1554_s10, 4  ;;  %s213_s17 = int_to_ptr.hbm [resolvable:$true] %s212_s17  ;;  %s230_s13 = int_to_ptr.vmem [resolvable:$true] %s229_s13 }
  0x26   : > { %1138 = dma.hbm_to_vmem [thread:$0]  (!%p1673_p10), %s213_s17, 2048, %s215_s12, [#allocation9], %s1888_s30, %s1888_s30, %s1892_s8  }
  0x27   : > { %p51_p11 = scmp.ne.s32.totalorder %s1528_s23, %s1524_s22  ;;  %p52_p12 = scmp.eq.s32.totalorder %s1548_s28, 0 }
  0x28   : > { %p57_p13 = scmp.ne.s32.totalorder %s1524_s22, %s1520_s21  ;;  %p1156_p1 = scmp.lt.s32.totalorder %s1548_s28, 4 }
  0x29   : > { %s227_s2 = sshll.u32 %s1921_s4, 4  ;;  %s240_s15 = sand.u32 1, %s1528_s23   ;;  %s228_s2 = int_to_ptr.hbm [resolvable:$true] %s227_s2 }
  0x2a   : > { %1141 = dma.hbm_to_vmem [thread:$0]  (!%p1673_p10), %s228_s2, 64, %s230_s13, [#allocation9]  }
  0x2b   : > { %p53_p3 = por %p52_p12, %p51_p11  ;;  %p1708_p5 = por %p58_p0, %p57_p13 }
  0x2c   : > { %s1111_s2 = smul.u32 40, %s240_s15  ;;  %s1923_s0 = sld [smem:[#allocation26_spill]] }
  0x2d   : > { %s1112_s14 = smul.u32 40, %s1544_s27  ;;  %p1143_p7 = pnand %p1156_p1, %p53_p3 }
  0x2e   : > { %s244_s10 = scalar_lea.vmem [#allocation2], %s1111_s2  ;;  %s241_s30 = scalar_lea.sflag [#allocation3], %s240_s15 }
  0x2f   : > { %s252_s13 = sshll.u32 %s244_s10, 4  ;;  %s1924_s4 = smov 128   ;;  %s253_s13 = int_to_ptr.vmem [resolvable:$true] %s252_s13 }
  0x30   : > { %s72_s7 = sadd.s32 1, %s1516_s20  ;;  %s34_s18 = sadd.s32 1, %s1540_s26 }
  0x31   : > { %p79_p9 = scmp.ne.s32.totalorder %s1516_s20, %s1512_s19  ;;  %p35_p10 = scmp.ge.s32.totalorder %s34_s18, 2 }
  0x32   : > { %s249_s16 = scalar_lea.hbm %s1923_s0, %s1112_s14  ;;  %s262_s14 = sand.u32 1, %s1548_s28  }
  0x33   : > { %s250_s3 = sshll.u32 %s249_s16, 4  ;;  %p1728_p11 = por %p79_p9, %p52_p12  ;;  %s251_s3 = int_to_ptr.hbm [resolvable:$true] %s250_s3 }
  0x34   : > { %1145 = dma.hbm_to_vmem [thread:$0]  (!%p1143_p7), %s251_s3, 640, %s253_s13, %s241_s30, %s1924_s4, %s1924_s4, %s1892_s8  }
  0x35   : > { %p1734_p13 = por %p174_p2, %p79_p9  ;;  %s1953_s18 = smov (%p35_p10, %s34_s18), 0 }
  0x36   : > { %1928 = sst [smem:[#allocation25_spill]] %s1953_s18  ;;  %s1955_s9 = smov (!%p35_p10, %s37_s9), %s1544_s27 }
  0x37   : > { %s1926_s21 = scalar_select %p1734_p13, 1, 0 }
  0x38   : > { %s68_s3 = ssub.s32 %s1540_s26, %s1953_s18  ;;  %p39_p3 = scmp.ge.s32.totalorder %s1955_s9, 2 }
  0x39   : > { %1927 = sst [smem:[#allocation24_spill]] %s1926_s21  ;;  %s264_s30 = sand.u32 1, %s1516_s20  }
  0x3a   : > { %s1038_s15 = sshll.u32 %s264_s30, 4  ;;  %s1039_s12 = sshll.u32 %s1540_s26, 1 }
  0x3b   : > { %s1957_s9 = smov (%p39_p3, %s1955_s9), 0  ;;  %s1040_s16 = sshll.u32 %s1544_s27, 2 }
  0x3c   : > { %s41_s10 = ssub.s32 %s1544_s27, %s1957_s9  ;;  %s271_s13 = sadd.s32 %s1040_s16, %s1039_s12 }
  0x3d   : > { %p42_p2 = scmp.eq.s32.totalorder %s41_s10, 0  ;;  %s69_s8 = sor.u32 %s68_s3, %s41_s10 }
  0x3e   : > { %p70_p12 = scmp.eq.s32.totalorder %s69_s8, 0  ;;  %s1041_s0 = sshll.u32 %s271_s13, 3 }
  0x3f   : > { %s1929_s21 = sadd.s32 1, %s1528_s23  ;;  %s273_s26 = scalar_lea.hbm %s1883_s1, %s1041_s0 }
  0x40   : > { %s1753_s5 = scalar_select %p42_p2, %s1528_s23, %s1929_s21  }
  0x41   : > { %s1756_s18 = scalar_select %p70_p12, %s1516_s20, %s72_s7  }
  0x42   : > { %s266_s24 = scalar_lea.vmem [#allocation5], %s1038_s15  ;;  %s274_s19 = sshll.u32 %s273_s26, 4  ;;  %s275_s19 = int_to_ptr.hbm [resolvable:$true] %s274_s19 }
  0x43   : > { %s276_s6 = sshll.u32 %s266_s24, 4  ;;  %p1146_p7 = pnand %p1156_p1, %p1728_p11  ;;  %s277_s6 = int_to_ptr.vmem [resolvable:$true] %s276_s6 }
  0x44   : > { %s263_s3 = scalar_lea.sflag [#allocation6], %s262_s14  ;;  %s1930_s8 = smov 8  }
  0x45   : > { %1148 = dma.hbm_to_vmem [thread:$0]  (!%p1146_p7), %s275_s19, 256, %s277_s6, %s263_s3, %s1924_s4, %s1924_s4, %s1930_s8  }
  0x46   : > { %288 = sbr.rel (%p1665_p8) target bundleno = 731 (0x2db), region = 40  ;;  %s290_s25 = sand.u32 (!%p1665_p8), 1, %s1524_s22  }
  0x47   : > { %s1771_s0 = smul.u32 (!%p1665_p8), 40, %s290_s25  ;;  %s291_s24 = scalar_lea.sflag (!%p1665_p8), [#allocation3], %s290_s25 }
  0x49   : > { %s294_s26 = scalar_lea.vmem (!%p1665_p8), [#allocation2], %s1771_s0 }
  0x4b   : > { %1487 = dma.done.wait (%p1708_p5), %s291_s24, 640  }
  0x4c   : > { %1489 = vsyncadd (%p1708_p5), %s291_s24, 4294966656  ;;  %s1931_s7 = sld [smem:[#allocation18_spill]]  ;;  %s300_s19 = sand.u32 1, %s1643_s29  }
  0x4d   : > { %s301_s14 = scalar_lea.sflag [#allocation6], %s300_s19 }
  0x52   : > { %s302_s6 = sand.u32 1, %s1931_s7  }
  0x53   : > { %s1782_s11 = sshll.u32 %s302_s6, 4 }
  0x54   : > { %s304_s2 = scalar_lea.vmem [#allocation5], %s1782_s11 }
  0x55   : > { %1491 = dma.done.wait (%p1652_p4), %s301_s14, 256  }
  0x56   : > { %1493 = vsyncadd (%p1652_p4), %s301_s14, 4294967040 }
  0x57   : > { %1495 = dma.done.wait (%p58_p0), [#allocation6], 18432  }
  0x58   : > { %1497 = vsyncadd (%p58_p0), [#allocation6], 4294948864 }
  0x59   : > { %1499 = dma.done.wait (%p58_p0), [#allocation9], 2112  }
  0x5a   : > { %1501 = vsyncadd (%p58_p0), [#allocation9], 4294965184  ;;  %v409_v0 = vld [vmem:[#allocation7 + $0x78] sm:$0xff]  ;;  %v408_v2 = vld [vmem:[#allocation7 + $0x70] sm:$0xff]  ;;  %s1933_s29 = sld [smem:[#allocation19_spill]]  ;;  %s351_s13 = scalar_lea.vmem [#allocation11], %s1782_s11 }
  0x5b   : > { %v441_v1 = vld [vmem:[#allocation7 + $0x178] sm:$0xff]  ;;  %539 = vmatpush.msra.mxu0 %v409_v0  ;;  %v440_v3 = vld [vmem:[#allocation7 + $0x170] sm:$0xff]  ;;  %v407_v4 = vld [vmem:[#allocation7 + $0x68] sm:$0xff]  ;;  %s1934_s15 = sld [smem:[#allocation20_spill]]  ;;  %s860_s4 = sshll.u32 %s351_s13, 4  ;;  %s861_s4 = int_to_ptr.vmem [resolvable:$true] %s860_s4 }
  0x5c   : > { %585 = vmatpush.msra.mxu2 %v441_v1  ;;  %v439_v5 = vld [vmem:[#allocation7 + $0x168] sm:$0xff]  ;;  %v406_v6 = vld [vmem:[#allocation7 + $0x60] sm:$0xff]  ;;  %v457_v7 = vld [vmem:[#allocation7 + $0x1f8] sm:$0xff]  ;;  %s1935_s25 = sld [smem:[#allocation30_spill]]  ;;  %s846_s11 = scalar_lea.sflag [#allocation4], %s302_s6 }
  0x5d   : > { %540 = vmatpush.msra.mxu0 %v408_v2  ;;  %v438_v8 = vld [vmem:[#allocation7 + $0x160] sm:$0xff]  ;;  %608 = vmatpush.msra.mxu3 %v457_v7  ;;  %v425_v9 = vld [vmem:[#allocation7 + $0xf8] sm:$0xff]  ;;  %v456_v10 = vld [vmem:[#allocation7 + $0x1f0] sm:$0xff] }
  0x5e   : > { %586 = vmatpush.msra.mxu2 %v440_v3  ;;  %v424_v11 = vld [vmem:[#allocation7 + $0xf0] sm:$0xff]  ;;  %v405_v12 = vld [vmem:[#allocation7 + $0x58] sm:$0xff]  ;;  %562 = vmatpush.msra.mxu1 %v425_v9  ;;  %v455_v14 = vld [vmem:[#allocation7 + $0x1e8] sm:$0xff] }
  0x5f   : > { %541 = vmatpush.msra.mxu0 %v407_v4  ;;  %v437_v13 = vld [vmem:[#allocation7 + $0x158] sm:$0xff]  ;;  %609 = vmatpush.msra.mxu3 %v456_v10  ;;  %v423_v15 = vld [vmem:[#allocation7 + $0xe8] sm:$0xff]  ;;  %v454_v16 = vld [vmem:[#allocation7 + $0x1e0] sm:$0xff] }
  0x60   : > { %587 = vmatpush.msra.mxu2 %v439_v5  ;;  %v404_v17 = vld [vmem:[#allocation7 + $0x50] sm:$0xff]  ;;  %563 = vmatpush.msra.mxu1 %v424_v11  ;;  %v422_v19 = vld [vmem:[#allocation7 + $0xe0] sm:$0xff]  ;;  %v453_v20 = vld [vmem:[#allocation7 + $0x1d8] sm:$0xff]  ;;  %s1048_s17 = sshll.u32 %s1933_s29, 4  ;;  %s1074_s12 = sshll.u32 %s1933_s29, 1 }
  0x61   : > { %542 = vmatpush.msra.mxu0 %v406_v6  ;;  %v436_v18 = vld [vmem:[#allocation7 + $0x150] sm:$0xff]  ;;  %610 = vmatpush.msra.mxu3 %v455_v14  ;;  %v403_v21 = vld [vmem:[#allocation7 + $0x48] sm:$0xff]  ;;  %v421_v23 = vld [vmem:[#allocation7 + $0xd8] sm:$0xff]  ;;  %s1800_s21 = scalar_lea.vmem %s294_s26, %s1048_s17 [#allocation2]  ;;  %s1075_s16 = sshll.u32 %s1934_s15, 2 }
  0x62   : > { %588 = vmatpush.msra.mxu2 %v438_v8  ;;  %v435_v22 = vld [vmem:[#allocation7 + $0x148] sm:$0xff]  ;;  %564 = vmatpush.msra.mxu1 %v423_v15  ;;  %v452_v24 = vld [vmem:[#allocation7 + $0x1d0] sm:$0xff]  ;;  %v402_v25 = vld [vmem:[#allocation7 + $0x40] sm:$0xff]  ;;  %s857_s10 = sadd.s32 %s1075_s16, %s1074_s12  ;;  %s1936_s0 = smov %s1935_s25 }
  0x63   : > { %543 = vmatpush.msra.mxu0 %v405_v12  ;;  %611 = vmatpush.msra.mxu3 %v454_v16  ;;  %v434_v26 = vld [vmem:[#allocation7 + $0x140] sm:$0xff]  ;;  %v420_v27 = vld [vmem:[#allocation7 + $0xd0] sm:$0xff]  ;;  %v451_v28 = vld [vmem:[#allocation7 + $0x1c8] sm:$0xff]  ;;  %s1076_s30 = sshll.u32 %s857_s10, 3 }
  0x64   : > { %589 = vmatpush.msra.mxu2 %v437_v13  ;;  %565 = vmatpush.msra.mxu1 %v422_v19  ;;  %v401_v29 = vld [vmem:[#allocation7 + $0x38] sm:$0xff]  ;;  %v419_v31 = vld [vmem:[#allocation7 + $0xc8] sm:$0xff]  ;;  %v450_v32 = vld [vmem:[#allocation7 + $0x1c0] sm:$0xff]  ;;  %s859_s24 = scalar_lea.hbm %s1935_s25, %s1076_s30 }
  0x65   : > { %544 = vmatpush.msra.mxu0 %v404_v17  ;;  %612 = vmatpush.msra.mxu3 %v453_v20  ;;  %v433_v30 = vld [vmem:[#allocation7 + $0x138] sm:$0xff]  ;;  %v400_v33 = vld [vmem:[#allocation7 + $0x30] sm:$0xff]  ;;  %v418_v35 = vld [vmem:[#allocation7 + $0xc0] sm:$0xff]  ;;  %s862_s19 = sshll.u32 %s859_s24, 4  ;;  %s863_s19 = int_to_ptr.hbm [resolvable:$true] %s862_s19 }
  0x66   : > { %590 = vmatpush.msra.mxu2 %v436_v18  ;;  %566 = vmatpush.msra.mxu1 %v421_v23  ;;  %v432_v34 = vld [vmem:[#allocation7 + $0x130] sm:$0xff]  ;;  %v449_v36 = vld [vmem:[#allocation7 + $0x1b8] sm:$0xff]  ;;  %v399_v37 = vld [vmem:[#allocation7 + $0x28] sm:$0xff]  ;;  %s1428_s14 = sshra.s32 %s863_s19, 4  ;;  %s1429_s14 = int_to_ptr.hbm [resolvable:$true] %s1428_s14 }
  0x67   : > { %545 = vmatpush.msra.mxu0 %v403_v21  ;;  %613 = vmatpush.msra.mxu3 %v452_v24  ;;  %v431_v38 = vld [vmem:[#allocation7 + $0x128] sm:$0xff]  ;;  %v417_v39 = vld [vmem:[#allocation7 + $0xb8] sm:$0xff]  ;;  %v448_v40 = vld [vmem:[#allocation7 + $0x1b0] sm:$0xff]  ;;  %p1435_p1 = scmp.lt.s32.totalorder %s1429_s14, %s1936_s0 }
  0x68   : > { %591 = vmatpush.msra.mxu2 %v435_v22  ;;  %567 = vmatpush.msra.mxu1 %v420_v27  ;;  %v398_v41 = vld [vmem:[#allocation7 + $0x20] sm:$0xff]  ;;  %v416_v43 = vld [vmem:[#allocation7 + $0xb0] sm:$0xff]  ;;  %v447_v44 = vld [vmem:[#allocation7 + $0x1a8] sm:$0xff] }
  0x69   : > { %546 = vmatpush.msra.mxu0 %v402_v25  ;;  %614 = vmatpush.msra.mxu3 %v451_v28  ;;  %v430_v42 = vld [vmem:[#allocation7 + $0x120] sm:$0xff]  ;;  %v397_v45 = vld [vmem:[#allocation7 + $0x18] sm:$0xff]  ;;  %v415_v47 = vld [vmem:[#allocation7 + $0xa8] sm:$0xff] }
  0x6a   : > { %592 = vmatpush.msra.mxu2 %v434_v26  ;;  %568 = vmatpush.msra.mxu1 %v419_v31  ;;  %v429_v46 = vld [vmem:[#allocation7 + $0x118] sm:$0xff]  ;;  %v446_v48 = vld [vmem:[#allocation7 + $0x1a0] sm:$0xff]  ;;  %v396_v49 = vld [vmem:[#allocation7 + $0x10] sm:$0xff] }
  0x6b   : > { %547 = vmatpush.msra.mxu0 %v401_v29  ;;  %615 = vmatpush.msra.mxu3 %v450_v32  ;;  %v428_v50 = vld [vmem:[#allocation7 + $0x110] sm:$0xff]  ;;  %v414_v51 = vld [vmem:[#allocation7 + $0xa0] sm:$0xff]  ;;  %v445_v52 = vld [vmem:[#allocation7 + $0x198] sm:$0xff] }
  0x6c   : > { %593 = vmatpush.msra.mxu2 %v433_v30  ;;  %569 = vmatpush.msra.mxu1 %v418_v35  ;;  %v395_v53 = vld [vmem:[#allocation7 + $0x8] sm:$0xff]  ;;  %v413_v55 = vld [vmem:[#allocation7 + $0x98] sm:$0xff]  ;;  %v444_v56 = vld [vmem:[#allocation7 + $0x190] sm:$0xff] }
  0x6d   : > { %548 = vmatpush.msra.mxu0 %v400_v33  ;;  %616 = vmatpush.msra.mxu3 %v449_v36  ;;  %v427_v54 = vld [vmem:[#allocation7 + $0x108] sm:$0xff]  ;;  %v394_v57 = vld [vmem:[#allocation7] sm:$0xff]  ;;  %v473_v59 = vld [vmem:[#allocation7 + $0x278] sm:$0xff] }
  0x6e   : > { %594 = vmatpush.msra.mxu2 %v432_v34  ;;  %570 = vmatpush.msra.mxu1 %v417_v39  ;;  %v426_v58 = vld [vmem:[#allocation7 + $0x100] sm:$0xff]  ;;  %v505_v60 = vld [vmem:[#allocation7 + $0x378] sm:$0xff]  ;;  %v412_v61 = vld [vmem:[#allocation7 + $0x90] sm:$0xff] }
  0x6f   : > { %549 = vmatpush.msra.mxu0 %v399_v37  ;;  %617 = vmatpush.msra.mxu3 %v448_v40  ;;  %v443_v62 = vld [vmem:[#allocation7 + $0x188] sm:$0xff]  ;;  %v472_v63 = vld [vmem:[#allocation7 + $0x270] sm:$0xff]  ;;  %v442_v2 = vld [vmem:[#allocation7 + $0x180] sm:$0xff] }
  0x70   : > { %595 = vmatpush.msra.mxu2 %v431_v38  ;;  %571 = vmatpush.msra.mxu1 %v416_v43  ;;  %v504_v0 = vld [vmem:[#allocation7 + $0x370] sm:$0xff]  ;;  %v411_v1 = vld [vmem:[#allocation7 + $0x88] sm:$0xff]  ;;  %v521_v5 = vld [vmem:[#allocation7 + $0x3f8] sm:$0xff] }
  0x71   : > { %550 = vmatpush.msra.mxu0 %v398_v41  ;;  %618 = vmatpush.msra.mxu3 %v447_v44  ;;  %v471_v3 = vld [vmem:[#allocation7 + $0x268] sm:$0xff]  ;;  %v410_v6 = vld [vmem:[#allocation7 + $0x80] sm:$0xff]  ;;  %v489_v9 = vld [vmem:[#allocation7 + $0x2f8] sm:$0xff] }
  0x72   : > { %596 = vmatpush.msra.mxu2 %v430_v42  ;;  %572 = vmatpush.msra.mxu1 %v415_v47  ;;  %v503_v4 = vld [vmem:[#allocation7 + $0x368] sm:$0xff]  ;;  %v470_v7 = vld [vmem:[#allocation7 + $0x260] sm:$0xff]  ;;  %v520_v10 = vld [vmem:[#allocation7 + $0x3f0] sm:$0xff] }
  0x73   : > { %551 = vmatpush.msra.mxu0 %v397_v45  ;;  %619 = vmatpush.msra.mxu3 %v446_v48  ;;  %v502_v8 = vld [vmem:[#allocation7 + $0x360] sm:$0xff]  ;;  %v469_v11 = vld [vmem:[#allocation7 + $0x258] sm:$0xff]  ;;  %v488_v13 = vld [vmem:[#allocation7 + $0x2f0] sm:$0xff] }
  0x74   : > { %597 = vmatpush.msra.mxu2 %v429_v46  ;;  %573 = vmatpush.msra.mxu1 %v414_v51  ;;  %v501_v12 = vld [vmem:[#allocation7 + $0x358] sm:$0xff]  ;;  %v519_v14 = vld [vmem:[#allocation7 + $0x3e8] sm:$0xff]  ;;  %v468_v15 = vld [vmem:[#allocation7 + $0x250] sm:$0xff] }
  0x75   : > { %552 = vmatpush.msra.mxu0 %v396_v49  ;;  %620 = vmatpush.msra.mxu3 %v445_v52  ;;  %v500_v16 = vld [vmem:[#allocation7 + $0x350] sm:$0xff]  ;;  %v487_v17 = vld [vmem:[#allocation7 + $0x2e8] sm:$0xff]  ;;  %v518_v18 = vld [vmem:[#allocation7 + $0x3e0] sm:$0xff] }
  0x76   : > { %598 = vmatpush.msra.mxu2 %v428_v50  ;;  %574 = vmatpush.msra.mxu1 %v413_v55  ;;  %v467_v19 = vld [vmem:[#allocation7 + $0x248] sm:$0xff]  ;;  %v486_v21 = vld [vmem:[#allocation7 + $0x2e0] sm:$0xff]  ;;  %v517_v22 = vld [vmem:[#allocation7 + $0x3d8] sm:$0xff] }
  0x77   : > { %553 = vmatpush.msra.mxu0 %v395_v53  ;;  %621 = vmatpush.msra.mxu3 %v444_v56  ;;  %v499_v20 = vld [vmem:[#allocation7 + $0x348] sm:$0xff]  ;;  %v466_v23 = vld [vmem:[#allocation7 + $0x240] sm:$0xff]  ;;  %v485_v25 = vld [vmem:[#allocation7 + $0x2d8] sm:$0xff] }
  0x78   : > { %599 = vmatpush.msra.mxu2 %v427_v54  ;;  %575 = vmatpush.msra.mxu1 %v412_v61  ;;  %v498_v24 = vld [vmem:[#allocation7 + $0x340] sm:$0xff]  ;;  %v516_v26 = vld [vmem:[#allocation7 + $0x3d0] sm:$0xff]  ;;  %v465_v27 = vld [vmem:[#allocation7 + $0x238] sm:$0xff] }
  0x79   : > { %554 = vmatpush.msra.mxu0 %v394_v57  ;;  %622 = vmatpush.msra.mxu3 %v443_v62  ;;  %v497_v28 = vld [vmem:[#allocation7 + $0x338] sm:$0xff]  ;;  %v484_v29 = vld [vmem:[#allocation7 + $0x2d0] sm:$0xff]  ;;  %v515_v30 = vld [vmem:[#allocation7 + $0x3c8] sm:$0xff] }
  0x7a   : > { %600 = vmatpush.msra.mxu2 %v426_v58  ;;  %576 = vmatpush.msra.mxu1 %v411_v1  ;;  %v464_v31 = vld [vmem:[#allocation7 + $0x230] sm:$0xff]  ;;  %v463_v33 = vld [vmem:[#allocation7 + $0x228] sm:$0xff]  ;;  %v514_v37 = vld [vmem:[#allocation7 + $0x3c0] sm:$0xff] }
  0x7b   : > { %631 = vmatpush.msrb.mxu0 %v473_v59  ;;  %623 = vmatpush.msra.mxu3 %v442_v2  ;;  %v496_v32 = vld [vmem:[#allocation7 + $0x330] sm:$0xff]  ;;  %v483_v35 = vld [vmem:[#allocation7 + $0x2c8] sm:$0xff]  ;;  %v462_v39 = vld [vmem:[#allocation7 + $0x220] sm:$0xff] }
  0x7c   : > { %677 = vmatpush.msrb.mxu2 %v505_v60  ;;  %577 = vmatpush.msra.mxu1 %v410_v6  ;;  %v1053_v34 = vld [vmem:[%s1800_s21 + $0x2] sm:$0xff]  ;;  %v495_v36 = vld [vmem:[#allocation7 + $0x328] sm:$0xff]  ;;  %v494_v40 = vld [vmem:[#allocation7 + $0x320] sm:$0xff] }
  0x7d   : > { %632 = vmatpush.msrb.mxu0 %v472_v63  ;;  %700 = vmatpush.msrb.mxu3 %v521_v5  ;;  %v356_v38 = vld [vmem:[%s1800_s21] sm:$0xff]  ;;  %v482_v42 = vld [vmem:[#allocation7 + $0x2c0] sm:$0xff]  ;;  %v461_v43 = vld [vmem:[#allocation7 + $0x218] sm:$0xff] }
  0x7e   : > { %678 = vmatpush.msrb.mxu2 %v504_v0  ;;  %654 = vmatpush.msrb.mxu1 %v489_v9  ;;  %v1056_v41 = vld [vmem:[%s1800_s21 + $0x3] sm:$0xff]  ;;  %v459_v51 = vld [vmem:[#allocation7 + $0x208] sm:$0xff]  ;;  %v458_v56 = vld [vmem:[#allocation7 + $0x200] sm:$0xff] }
  0x7f   : > { %633 = vmatpush.msrb.mxu0 %v471_v3  ;;  %701 = vmatpush.msrb.mxu3 %v520_v10  ;;  %v493_v44 = vld [vmem:[#allocation7 + $0x318] sm:$0xff]  ;;  %v460_v47 = vld [vmem:[#allocation7 + $0x210] sm:$0xff]  ;;  %v491_v52 = vld [vmem:[#allocation7 + $0x308] sm:$0xff] }
  0x80   : > { %679 = vmatpush.msrb.mxu2 %v503_v4  ;;  %655 = vmatpush.msrb.mxu1 %v488_v13  ;;  %v513_v45 = vld [vmem:[#allocation7 + $0x3b8] sm:$0xff]  ;;  %v492_v48 = vld [vmem:[#allocation7 + $0x310] sm:$0xff]  ;;  %v511_v54 = vld [vmem:[#allocation7 + $0x3a8] sm:$0xff] }
  0x81   : > { %634 = vmatpush.msrb.mxu0 %v470_v7  ;;  %702 = vmatpush.msrb.mxu3 %v519_v14  ;;  %v1050_v46 = vld [vmem:[%s1800_s21 + $0x1] sm:$0xff]  ;;  %v1054_v55 = vld [vmem:[%s1800_s21 + $0xa] sm:$0xff]  ;;  %v479_v58 = vld [vmem:[#allocation7 + $0x2a8] sm:$0xff] }
  0x82   : > { %680 = vmatpush.msrb.mxu2 %v502_v8  ;;  %656 = vmatpush.msrb.mxu1 %v487_v17  ;;  %v481_v49 = vld [vmem:[#allocation7 + $0x2b8] sm:$0xff]  ;;  %v512_v50 = vld [vmem:[#allocation7 + $0x3b0] sm:$0xff]  ;;  %v490_v57 = vld [vmem:[#allocation7 + $0x300] sm:$0xff] }
  0x83   : > { %635 = vmatpush.msrb.mxu0 %v469_v11  ;;  %703 = vmatpush.msrb.mxu3 %v518_v18  ;;  %v480_v53 = vld [vmem:[#allocation7 + $0x2b0] sm:$0xff]  ;;  %v510_v59 = vld [vmem:[#allocation7 + $0x3a0] sm:$0xff]  ;;  %v537_v60 = vld [vmem:[#allocation7 + $0x478] sm:$0xff] }
  0x84   : > { %681 = vmatpush.msrb.mxu2 %v501_v12  ;;  %657 = vmatpush.msrb.mxu1 %v486_v21  ;;  %v1808_v61 = vld [vmem:[%s1800_s21 + $0x8] sm:$0xff]  ;;  %v478_v63 = vld [vmem:[#allocation7 + $0x2a0] sm:$0xff]  ;;  %v536_v1 = vld [vmem:[#allocation7 + $0x470] sm:$0xff] }
  0x85   : > { %636 = vmatpush.msrb.mxu0 %v468_v15  ;;  %704 = vmatpush.msrb.mxu3 %v517_v22  ;;  %v1057_v62 = vld [vmem:[%s1800_s21 + $0xb] sm:$0xff]  ;;  %v508_v4 = vld [vmem:[#allocation7 + $0x390] sm:$0xff]  ;;  %v535_v5 = vld [vmem:[#allocation7 + $0x468] sm:$0xff] }
  0x86   : > { %682 = vmatpush.msrb.mxu2 %v500_v16  ;;  %658 = vmatpush.msrb.mxu1 %v485_v25  ;;  %v509_v0 = vld [vmem:[#allocation7 + $0x398] sm:$0xff]  ;;  %v476_v6 = vld [vmem:[#allocation7 + $0x290] sm:$0xff]  ;;  %v507_v7 = vld [vmem:[#allocation7 + $0x388] sm:$0xff] }
  0x87   : > { %637 = vmatpush.msrb.mxu0 %v467_v19  ;;  %705 = vmatpush.msrb.mxu3 %v516_v26  ;;  %v1051_v2 = vld [vmem:[%s1800_s21 + $0x9] sm:$0xff]  ;;  %v475_v10 = vld [vmem:[#allocation7 + $0x288] sm:$0xff]  ;;  %v532_v16 = vld [vmem:[#allocation7 + $0x450] sm:$0xff] }
  0x88   : > { %683 = vmatpush.msrb.mxu2 %v499_v20  ;;  %659 = vmatpush.msrb.mxu1 %v484_v29  ;;  %v477_v3 = vld [vmem:[#allocation7 + $0x298] sm:$0xff]  ;;  %v534_v8 = vld [vmem:[#allocation7 + $0x460] sm:$0xff]  ;;  %v531_v18 = vld [vmem:[#allocation7 + $0x448] sm:$0xff] }
  0x89   : > { %638 = vmatpush.msrb.mxu0 %v466_v23  ;;  %706 = vmatpush.msrb.mxu3 %v515_v30  ;;  %v1065_v9 = vld [vmem:[%s1800_s21 + $0x6] sm:$0xff]  ;;  %v506_v11 = vld [vmem:[#allocation7 + $0x380] sm:$0xff]  ;;  %v527_v26 = vld [vmem:[#allocation7 + $0x428] sm:$0xff] }
  0x8a   : > { %684 = vmatpush.msrb.mxu2 %v498_v24  ;;  %660 = vmatpush.msrb.mxu1 %v483_v35  ;;  %v533_v12 = vld [vmem:[#allocation7 + $0x458] sm:$0xff]  ;;  %v474_v15 = vld [vmem:[#allocation7 + $0x280] sm:$0xff]  ;;  %v528_v24 = vld [vmem:[#allocation7 + $0x430] sm:$0xff] }
  0x8b   : > { %639 = vmatpush.msrb.mxu0 %v465_v27  ;;  %601 = vmatmul.f32.vlgmr.msra.gmra.mxu2 %v1053_v34  ;;  %v1059_v13 = vld [vmem:[%s1800_s21 + $0x4] sm:$0xff]  ;;  %v530_v19 = vld [vmem:[#allocation7 + $0x440] sm:$0xff]  ;;  %v523_v30 = vld [vmem:[#allocation7 + $0x408] sm:$0xff] }
  0x8c   : > { %685 = vmatpush.msrb.mxu2 %v497_v28  ;;  %707 = vmatpush.msrb.mxu3 %v514_v37  ;;  %v1068_v14 = vld [vmem:[%s1800_s21 + $0x7] sm:$0xff]  ;;  %v1069_v23 = vld [vmem:[%s1800_s21 + $0xf] sm:$0xff]  ;;  %v761_v35 = vld [vmem:[#allocation8 + $0x68] sm:$0xff] }
  0x8d   : > { %640 = vmatpush.msrb.mxu0 %v464_v31  ;;  %624 = vmatmul.f32.vlgmr.msra.gmra.mxu3 %v1056_v41  ;;  %v1062_v17 = vld [vmem:[%s1800_s21 + $0x5] sm:$0xff]  ;;  %v1066_v20 = vld [vmem:[%s1800_s21 + $0xe] sm:$0xff] }
  0x8e   : > { %686 = vmatpush.msrb.mxu2 %v496_v32  ;;  %555 = vmatmul.f32.vlgmr.msra.gmra.mxu0 %v356_v38  ;;  %v529_v21 = vld [vmem:[#allocation7 + $0x438] sm:$0xff]  ;;  %v526_v27 = vld [vmem:[#allocation7 + $0x420] sm:$0xff]  ;;  %v524_v29 = vld [vmem:[#allocation7 + $0x410] sm:$0xff] }
  0x8f   : > { %641 = vmatpush.msrb.mxu0 %v463_v33  ;;  %661 = vmatpush.msrb.mxu1 %v482_v42  ;;  %v1060_v22 = vld [vmem:[%s1800_s21 + $0xc] sm:$0xff]  ;;  %v762_v34 = vld [vmem:[#allocation8 + $0x70] sm:$0xff] }
  0x90   : > { %687 = vmatpush.msrb.mxu2 %v495_v36  ;;  %708 = vmatpush.msrb.mxu3 %v513_v45  ;;  %v1063_v25 = vld [vmem:[%s1800_s21 + $0xd] sm:$0xff]  ;;  %v758_v38 = vld [vmem:[#allocation8 + $0x50] sm:$0xff] }
  0x91   : > { %642 = vmatpush.msrb.mxu0 %v462_v39  ;;  %578 = vmatmul.f32.vlgmr.msra.gmra.mxu1 %v1050_v46  ;;  %v525_v28 = vld [vmem:[#allocation7 + $0x418] sm:$0xff]  ;;  %v522_v31 = vld [vmem:[#allocation7 + $0x400] sm:$0xff]  ;;  %v757_v39 = vld [vmem:[#allocation8 + $0x48] sm:$0xff] }
  0x92   : > { %688 = vmatpush.msrb.mxu2 %v494_v40  ;;  %662 = vmatpush.msrb.mxu1 %v481_v49  ;;  %v1072_v32 = vld [vmem:[%s1800_s21 + $0x10] sm:$0xff]  ;;  %v763_v33 = vld [vmem:[#allocation8 + $0x78] sm:$0xff]  ;;  %v754_v42 = vld [vmem:[#allocation8 + $0x30] sm:$0xff]  ;;  %s1434_s21 = scalar_lea.hbm %s1936_s0, 64 }
  0x93   : > { %643 = vmatpush.msrb.mxu0 %v461_v43  ;;  %709 = vmatpush.msrb.mxu3 %v512_v50  ;;  %v760_v36 = vld [vmem:[#allocation8 + $0x60] sm:$0xff]  ;;  %v759_v37 = vld [vmem:[#allocation8 + $0x58] sm:$0xff]  ;;  %v750_v49 = vld [vmem:[#allocation8 + $0x10] sm:$0xff] }
  0x94   : > { %689 = vmatpush.msrb.mxu2 %v493_v44  ;;  %663 = vmatpush.msrb.mxu1 %v480_v53  ;;  %v756_v40 = vld [vmem:[#allocation8 + $0x40] sm:$0xff]  ;;  %v755_v41 = vld [vmem:[#allocation8 + $0x38] sm:$0xff]  ;;  %v753_v44 = vld [vmem:[#allocation8 + $0x28] sm:$0xff] }
  0x95   : > { %644 = vmatpush.msrb.mxu0 %v460_v47  ;;  %710 = vmatpush.msrb.mxu3 %v511_v54  ;;  %v752_v45 = vld [vmem:[#allocation8 + $0x20] sm:$0xff]  ;;  %v751_v46 = vld [vmem:[#allocation8 + $0x18] sm:$0xff] }
  0x96   : > { %690 = vmatpush.msrb.mxu2 %v492_v48  ;;  %664 = vmatpush.msrb.mxu1 %v479_v58  ;;  %v1256_v48 = vld [vmem:[#allocation10] ss:$0 sm:$0xff] }
  0x97   : > { %645 = vmatpush.msrb.mxu0 %v459_v51  ;;  %604 = vmatmul.f32.gmra.mxu2 %v1054_v55  ;;  %v749_v51 = vld [vmem:[#allocation8 + $0x8] sm:$0xff]  ;;  %v748_v54 = vld [vmem:[#allocation8] sm:$0xff] }
  0x98   : > { %691 = vmatpush.msrb.mxu2 %v491_v52  ;;  %711 = vmatpush.msrb.mxu3 %v510_v59 }
  0x99   : > { %646 = vmatpush.msrb.mxu0 %v458_v56  ;;  %627 = vmatmul.f32.gmra.mxu3 %v1057_v62 }
  0x9a   : > { %692 = vmatpush.msrb.mxu2 %v490_v57  ;;  %558 = vmatmul.f32.gmra.mxu0 %v1808_v61 }
  0x9b   : > { %723 = vmatpush.msra.mxu0 %v537_v60  ;;  %665 = vmatpush.msrb.mxu1 %v478_v63 }
  0x9c   : > { %1079 = vmatpush.msra.mxu2 %v537_v60  ;;  %712 = vmatpush.msrb.mxu3 %v509_v0 }
  0x9d   : > { %724 = vmatpush.msra.mxu0 %v536_v1  ;;  %581 = vmatmul.f32.gmra.mxu1 %v1051_v2 }
  0x9e   : > { %1080 = vmatpush.msra.mxu2 %v536_v1  ;;  %666 = vmatpush.msrb.mxu1 %v477_v3 }
  0x9f   : > { %713 = vmatpush.msrb.mxu3 %v508_v4  ;;  %725 = vmatpush.msra.mxu0 %v535_v5 }
  0xa0   : > { %1081 = vmatpush.msra.mxu2 %v535_v5  ;;  %667 = vmatpush.msrb.mxu1 %v476_v6 }
  0xa1   : > { %714 = vmatpush.msrb.mxu3 %v507_v7  ;;  %726 = vmatpush.msra.mxu0 %v534_v8 }
  0xa2   : > { %1082 = vmatpush.msra.mxu2 %v534_v8  ;;  %668 = vmatpush.msrb.mxu1 %v475_v10 }
  0xa3   : > { %693 = vmatmul.f32.vlgmr.msrb.gmra.mxu2 %v1065_v9  ;;  %715 = vmatpush.msrb.mxu3 %v506_v11 }
  0xa4   : > { %727 = vmatpush.msra.mxu0 %v533_v12  ;;  %1083 = vmatpush.msra.mxu2 %v533_v12 }
  0xa5   : > { %647 = vmatmul.f32.vlgmr.msrb.gmra.mxu0 %v1059_v13  ;;  %716 = vmatmul.f32.vlgmr.msrb.gmra.mxu3 %v1068_v14 }
  0xa6   : > { %669 = vmatpush.msrb.mxu1 %v474_v15  ;;  %728 = vmatpush.msra.mxu0 %v532_v16 }
  0xa7   : > { %1084 = vmatpush.msra.mxu2 %v532_v16  ;;  %670 = vmatmul.f32.vlgmr.msrb.gmra.mxu1 %v1062_v17 }
  0xa8   : > { %729 = vmatpush.msra.mxu0 %v531_v18  ;;  %765 = vmatpush.msra.mxu1 %v763_v33 }
  0xa9   : > { %1085 = vmatpush.msra.mxu2 %v531_v18  ;;  %1095 = vmatpush.msra.mxu3 %v763_v33  ;;  %v800_v33 = vlaneseq }
  0xaa   : > { %730 = vmatpush.msra.mxu0 %v530_v19  ;;  %766 = vmatpush.msra.mxu1 %v762_v34 }
  0xab   : > { %1086 = vmatpush.msra.mxu2 %v530_v19  ;;  %1096 = vmatpush.msra.mxu3 %v762_v34  ;;  %v801_v34 = vand.u32 127, %v800_v33 }
  0xac   : > { %696 = vmatmul.f32.gmra.mxu2 %v1066_v20  ;;  %731 = vmatpush.msra.mxu0 %v529_v21 }
  0xad   : > { %1087 = vmatpush.msra.mxu2 %v529_v21  ;;  %650 = vmatmul.f32.gmra.mxu0 %v1060_v22  ;;  %vm802_vm0 = vcmp.lt.s32.totalorder %v801_v34, 32 }
  0xae   : > { %719 = vmatmul.f32.gmra.mxu3 %v1069_v23  ;;  %732 = vmatpush.msra.mxu0 %v528_v24 }
  0xaf   : > { %1088 = vmatpush.msra.mxu2 %v528_v24  ;;  %673 = vmatmul.f32.gmra.mxu1 %v1063_v25  ;;  %v1257_v24 = vld [vmem:[#allocation10 + $0x1] ss:$0 sm:$0xff] }
  0xb0   : > { %733 = vmatpush.msra.mxu0 %v527_v26  ;;  %767 = vmatpush.msra.mxu1 %v761_v35 }
  0xb1   : > { %1089 = vmatpush.msra.mxu2 %v527_v26  ;;  %1097 = vmatpush.msra.mxu3 %v761_v35  ;;  %v788_v26 = vld [vmem:[%s304_s2] sm:$0xff] }
  0xb2   : > { %734 = vmatpush.msra.mxu0 %v526_v27  ;;  %768 = vmatpush.msra.mxu1 %v760_v36 }
  0xb3   : > { %1090 = vmatpush.msra.mxu2 %v526_v27  ;;  %1098 = vmatpush.msra.mxu3 %v760_v36 }
  0xb4   : > { %735 = vmatpush.msra.mxu0 %v525_v28  ;;  %769 = vmatpush.msra.mxu1 %v759_v37 }
  0xb5   : > { %1091 = vmatpush.msra.mxu2 %v525_v28  ;;  %1099 = vmatpush.msra.mxu3 %v759_v37 }
  0xb6   : > { %736 = vmatpush.msra.mxu0 %v524_v29  ;;  %770 = vmatpush.msra.mxu1 %v758_v38 }
  0xb7   : > { %1092 = vmatpush.msra.mxu2 %v524_v29  ;;  %1100 = vmatpush.msra.mxu3 %v758_v38 }
  0xb8   : > { %737 = vmatpush.msra.mxu0 %v523_v30  ;;  %771 = vmatpush.msra.mxu1 %v757_v39 }
  0xb9   : > { %1093 = vmatpush.msra.mxu2 %v523_v30  ;;  %1101 = vmatpush.msra.mxu3 %v757_v39  ;;  %v789_v30 = vld [vmem:[%s304_s2 + $0x8] sm:$0xff]  ;;  %s1430_s2 = scalar_lea.hbm %s1429_s14, 16 }
  0xba   : > { %738 = vmatpush.msra.mxu0 %v522_v31  ;;  %772 = vmatpush.msra.mxu1 %v756_v40  ;;  %p1431_p0 = scmp.ne.s32.totalorder %s1429_s14, %s1430_s2  ;;  %p1436_p5 = scmp.lt.s32.totalorder %s1434_s21, %s1430_s2 }
  0xbb   : > { %1094 = vmatpush.msra.mxu2 %v522_v31  ;;  %739 = vmatmul.f32.vlgmr.msra.gmra.mxu0 %v1808_v61 }
  0xbc   : > { %742 = vmatmul.f32.vlgmr.msra.gmra.mxu2 %v1072_v32  ;;  %1102 = vmatpush.msra.mxu3 %v756_v40  ;;  %p1432_p4 = pnand %p1431_p0, %p1734_p13  ;;  %p1437_p9 = por %p1436_p5, %p1435_p1 }
  0xbd   : > { %773 = vmatpush.msra.mxu1 %v755_v41 }
  0xbe   : > { %1103 = vmatpush.msra.mxu3 %v755_v41  ;;  %p1433_p8 = pneg %p1432_p4 }
  0xbf   : > { %774 = vmatpush.msra.mxu1 %v754_v42 }
  0xc0   : > { %1104 = vmatpush.msra.mxu3 %v754_v42  ;;  %p1438_p10 = pnand %p1437_p9, %p1433_p8 }
  0xc1   : > { %775 = vmatpush.msra.mxu1 %v753_v44 }
  0xc2   : > { %1105 = vmatpush.msra.mxu3 %v753_v44 }
  0xc3   : > { %776 = vmatpush.msra.mxu1 %v752_v45 }
  0xc4   : > { %1106 = vmatpush.msra.mxu3 %v752_v45 }
  0xc5   : > { %777 = vmatpush.msra.mxu1 %v751_v46 }
  0xc6   : > { %1107 = vmatpush.msra.mxu3 %v751_v46 }
  0xc7   : > { %778 = vmatpush.msra.mxu1 %v750_v49 }
  0xc8   : > { %1108 = vmatpush.msra.mxu3 %v750_v49 }
  0xc9   : > { %779 = vmatpush.msra.mxu1 %v749_v51 }
  0xca   : > { %1109 = vmatpush.msra.mxu3 %v749_v51 }
  0xcb   : > { %780 = vmatpush.msra.mxu1 %v748_v54 }
  0xcc   : > { %1110 = vmatpush.msra.mxu3 %v748_v54 }
 0x10b   : > { %v556_v43 = vpop.f32.mrf.mxu0 }
 0x10c   : > { %v557_v53 = vadd.f32 %v1256_v48, %v556_v43 }
 0x10e   : > { %v579_v47 = vpop.f32.mrf.mxu1  ;;  %v602_v50 = vpop.f32.mrf.mxu2 }
 0x10f   : > { %v580_v57 = vadd.f32 %v579_v47, %v557_v53 }
 0x110   : > { %v625_v55 = vpop.f32.mrf.mxu3 }
 0x111   : > { %v603_v60 = vadd.f32 %v602_v50, %v580_v57  ;;  %v1258_v57 = vld [vmem:[#allocation10 + $0x2] ss:$0 sm:$0xff] }
 0x113   : > { %v626_v0 = vadd.f32 %v625_v55, %v603_v60  ;;  %v1259_v60 = vld [vmem:[#allocation10 + $0x3] ss:$0 sm:$0xff] }
 0x117   : > { %v559_v52 = vpop.f32.mrf.mxu0 }
 0x118   : > { %v560_v58 = vadd.f32 %v1256_v48, %v559_v52 }
 0x11a   : > { %v582_v56 = vpop.f32.mrf.mxu1  ;;  %v605_v59 = vpop.f32.mrf.mxu2 }
 0x11b   : > { %v583_v62 = vadd.f32 %v582_v56, %v560_v58 }
 0x11c   : > { %v628_v63 = vpop.f32.mrf.mxu3 }
 0x11d   : > { %v606_v2 = vadd.f32 %v605_v59, %v583_v62 }
 0x11f   : > { %v629_v5 = vadd.f32 %v628_v63, %v606_v2 }
 0x122   : > { %v648_v61 = vpop.f32.mrf.mxu0 }
 0x123   : > { %v649_v3 = vadd.f32 %v648_v61, %v626_v0 }
 0x124   : > { %v671_v1 = vpop.f32.mrf.mxu1 }
 0x125   : > { %v672_v7 = vadd.f32 %v671_v1, %v649_v3 }
 0x126   : > { %v694_v4 = vpop.f32.mrf.mxu2 }
 0x127   : > { %v695_v11 = vadd.f32 %v694_v4, %v672_v7 }
 0x128   : > { %v717_v8 = vpop.f32.mrf.mxu3 }
 0x129   : > { %v718_v14 = vadd.f32 %v717_v8, %v695_v11 }
 0x12a   : > { %v651_v6 = vpop.f32.mrf.mxu0 }
 0x12b   : > { %v652_v9 = vadd.f32 %v651_v6, %v629_v5 }
 0x12c   : > { %v674_v10 = vpop.f32.mrf.mxu1 }
 0x12d   : > { %v675_v12 = vadd.f32 %v674_v10, %v652_v9 }
 0x12f   : > { %v697_v13 = vpop.f32.mrf.mxu2 }
 0x130   : > { %v698_v16 = vadd.f32 %v697_v13, %v675_v12 }
 0x131   : > { %v720_v18 = vpop.f32.mrf.mxu3 }
 0x132   : > { %v721_v20 = vadd.f32 %v720_v18, %v698_v16 }
 0x138   : > { %v740_v15 = vpop.f32.mrf.mxu0 }
 0x139   : > { %v741_v17 = vadd.f32 %v740_v15, %v718_v14 }
 0x13b   : > { %v746_v19 = vmax.f32 %v741_v17, 0.0 }
 0x13d   : > { %781 = vmatmul.f32.vlgmr.msra.gmra.mxu1 %v746_v19 }
 0x13f   : > { %v743_v21 = vpop.f32.mrf.mxu2 }
 0x140   : > { %v744_v22 = vadd.f32 %v743_v21, %v721_v20 }
 0x142   : > { %v747_v23 = vmax.f32 %v744_v22, 0.0 }
 0x144   : > { %784 = vmatmul.f32.vlgmr.msra.gmra.mxu3 %v747_v23 }
 0x1ba   : > { %v782_v25 = vpop.f32.mrf.mxu1 }
 0x1bb   : > { %v783_v27 = vadd.f32 %v1257_v24, %v782_v25 }
 0x1bd   : > { %v790_v28 = vadd.f32 %v788_v26, %v783_v27 }
 0x1bf   : > { %792 = vadd.xlane.f32.xlu0 %v790_v28 }
 0x1c7   : > { %v785_v29 = vpop.f32.mrf.mxu3 }
 0x1c8   : > { %v786_v31 = vadd.f32 %v1257_v24, %v785_v29 }
 0x1ca   : > { %v791_v32 = vadd.f32 %v789_v30, %v786_v31 }
 0x1cc   : > { %794 = vadd.xlane.f32.xlu0 %v791_v32 }
 0x232   : > { %v793_v35 = vpop.xlane.xlu0 %792 }
 0x233   : > { %v796_v36 = vmul.f32 0.03125, %v793_v35 }
 0x235   : > { %v798_v37 = vsub.f32 %v790_v28, %v796_v36 }
 0x237   : > { %v803_v38 = vsel %vm802_vm0, %v798_v37, 0.0 }
 0x238   : > { %v805_v39 = vmul.f32 %v803_v38, %v803_v38 }
 0x23a   : > { %807 = vadd.xlane.f32.xlu1 %v805_v39 }
 0x23f   : > { %v795_v40 = vpop.xlane.xlu0 %794 }
 0x240   : > { %v797_v41 = vmul.f32 0.03125, %v795_v40 }
 0x242   : > { %v799_v42 = vsub.f32 %v791_v32, %v797_v41 }
 0x244   : > { %v804_v43 = vsel %vm802_vm0, %v799_v42, 0.0 }
 0x245   : > { %v806_v44 = vmul.f32 %v804_v43, %v804_v43 }
 0x247   : > { %809 = vadd.xlane.f32.xlu1 %v806_v44 }
 0x2ad   : > { %v808_v45 = vpop.xlane.xlu1 %807 }
 0x2ae   : > { %v811_v46 = vmul.f32 0.03125, %v808_v45 }
 0x2b0   : > { %v813_v47 = vadd.f32 1e-05, %v811_v46 }
 0x2b2   : > { %1260 = vrsqrt.f32 %v813_v47  ;;  %vm821_vm2 = vweird.f32 %v813_v47 }
 0x2b8   : > { %v1261_v48 = vpop.eup %1260 }
 0x2b9   : > { %v816_v49 = vmul.f32 %v1261_v48, %v813_v47  ;;  %vm822_vm1 = vweird.f32 %v1261_v48 }
 0x2ba   : > { %v810_v50 = vpop.xlane.xlu1 %809  ;;  %vm823_vm3 = vmor %vm821_vm2, %vm822_vm1 }
 0x2bb   : > { %v812_v51 = vmul.f32 0.03125, %v810_v50  ;;  %v817_v52 = vmul.f32 %v1261_v48, %v816_v49 }
 0x2bd   : > { %v814_v53 = vadd.f32 1e-05, %v812_v51  ;;  %v818_v54 = vmul.f32 0.5, %v817_v52 }
 0x2bf   : > { %1262 = vrsqrt.f32 %v814_v53  ;;  %v819_v55 = vsub.f32 1.5, %v818_v54  ;;  %vm831_vm5 = vweird.f32 %v814_v53 }
 0x2c1   : > { %v820_v56 = vmul.f32 %v1261_v48, %v819_v55 }
 0x2c3   : > { %v824_v58 = vsel %vm823_vm3, %v1261_v48, %v820_v56 }
 0x2c4   : > { %v835_v61 = vmul.f32 %v824_v58, %v803_v38 }
 0x2c5   : > { %v1263_v59 = vpop.eup %1262 }
 0x2c6   : > { %v826_v62 = vmul.f32 %v1263_v59, %v814_v53  ;;  %v838_v63 = vmul.f32 %v1258_v57, %v835_v61  ;;  %vm832_vm4 = vweird.f32 %v1263_v59 }
 0x2c7   : > { %vm833_vm6 = vmor %vm831_vm5, %vm832_vm4 }
 0x2c8   : > { %v827_v0 = vmul.f32 %v1263_v59, %v826_v62  ;;  %v841_v1 = vadd.f32 %v1259_v60, %v838_v63 }
 0x2ca   : > { %v828_v2 = vmul.f32 0.5, %v827_v0  ;;  %843 = vst [vmem:[%s351_s13] sm:$0xff] %v841_v1 }
 0x2cc   : > { %v829_v3 = vsub.f32 1.5, %v828_v2 }
 0x2ce   : > { %v830_v4 = vmul.f32 %v1263_v59, %v829_v3 }
 0x2d0   : > { %v834_v5 = vsel %vm833_vm6, %v1263_v59, %v830_v4 }
 0x2d1   : > { %v836_v6 = vmul.f32 %v834_v5, %v804_v43 }
 0x2d3   : > { %v839_v7 = vmul.f32 %v1258_v57, %v836_v6 }
 0x2d5   : > { %v842_v8 = vadd.f32 %v1259_v60, %v839_v7 }
 0x2d7   : > { %844 = vst [vmem:[%s351_s13 + $0x8] sm:$0xff] %v842_v8 }
 0x2d8   : > { %1441 = shalt.err (!%p1438_p10)
}
 0x2d9   : > { %s1555_s7 = smov 128   ;;  %s1556_s6 = smov 8  }
 0x2da   : > { %1130 = dma.vmem_to_hbm [thread:$0]  (%p1734_p13), %s861_s4, 256, %s863_s19, %s846_s11, %s1555_s7, %s1555_s7, %s1556_s6  }
 0x2db PF: > { %s1938_s16 = sld [smem:[#allocation17_spill]]  ;;  %p1160_p11 = scmp.ge.s32.totalorder %s1548_s28, 2 }
 0x2dd   : > { %p1150_p3 = pnand %p1160_p11, %p1657_p6 }
 0x2df   : > { %p1151_p2 = pneg %p1150_p3 }
 0x2e1   : > { %s877_s13 = sand.u32 1, %s1938_s16  }
 0x2e2   : > { %s878_s30 = scalar_lea.sflag [#allocation4], %s877_s13 }
 0x2e3   : > { %1503 = dma.done.wait (%p1151_p2), %s878_s30, 256  }
 0x2e4   : > { %1505 = vsyncadd (%p1151_p2), %s878_s30, 4294967040  ;;  %s25_s28 = sadd.s32 1, %s1548_s28   ;;  %s1940_s3 = sld [smem:[#allocation18_spill]] }
 0x2e5   : > { %p22_p12 = scmp.ge.s32.totalorder %s25_s28, 6   ;;  %s1941_s8 = smov %s1756_s18 }
 0x2e6   : > { %s1942_s24 = sld [smem:[#allocation21_spill]]  ;;  %s1945_s19 = smov %s1516_s20 }
 0x2e7   : > { %s1943_s26 = sld [smem:[#allocation25_spill]]  ;;  %s1946_s20 = smov %s1941_s8 }
 0x2e8   : > { %s1947_s21 = smov %s1524_s22  ;;  %s1948_s22 = smov %s1528_s23 }
 0x2e9   : > { %s1949_s23 = smov %s1753_s5  ;;  %s1950_s25 = smov %s1544_s27 }
 0x2ea   : > { %s1944_s18 = smov %s1940_s3  ;;  %s1951_s27 = smov %s1957_s9 }
 0x2eb   :  { %24 = sbr.rel (!%p22_p12) target bundleno = 18 (0x12), region = 119 }
 0x2f0   :  { %884 = vsyncpa [#allocation3], 1 }
 0x2f1   :  { %886 = vsyncpa [#allocation3 + $0x1], 1 }
 0x2f2   :  { %887 = vsyncpa [#allocation6], 1 }
 0x2f3   :  { %889 = vsyncpa [#allocation6 + $0x1], 1 }
 0x2f4   :  { %890 = vsyncpa [#allocation9], 1 }
 0x2f5   :  { %891 = vsyncpa [#allocation4], 1 }
 0x2f6   :  { %893 = vsyncpa [#allocation4 + $0x1], 1 }

// kernel: tpu_custom_call.1
= control target key start
LH: loop header
LB: loop body
LE: loop exit
PB: predicated region body
PF: predicated region fallthrough
CT: control target
= control target key end

     0   :  { %s1882_s0 = inlined_call_operand.hbm [shape: f32[2,40,128], index: 0, kind: input, shape index: {}]   ;;  %s1883_s1 = inlined_call_operand.hbm [shape: f32[2,32,128], index: 1, kind: input, shape index: {}]   ;;  %s1884_s2 = inlined_call_operand.hbm [shape: f32[1152,128], index: 2, kind: input, shape index: {}]   ;;  %s1885_s3 = inlined_call_operand.hbm [shape: f32[128,128], index: 3, kind: input, shape index: {}]   ;;  %s1886_s4 = inlined_call_operand.hbm [shape: f32[4,128], index: 4, kind: input, shape index: {}]   ;;  %s1887_s5 = inlined_call_operand.hbm [shape: f32[2,32,128], index: 5, kind: output, shape index: {}]  }
   0x1   :  { %1903 = sst [smem:[#allocation26_spill]] %s1882_s0 }
   0x2   :  { %1904 = sst [smem:[#allocation27_spill]] %s1884_s2 }
   0x3   :  { %1905 = sst [smem:[#allocation28_spill]] %s1885_s3 }
   0x4   :  { %1906 = sst [smem:[#allocation29_spill]] %s1886_s4 }
   0x5   :  { %1907 = sst [smem:[#allocation30_spill]] %s1887_s5 }
   0x6   :  { %10 = vsyncpa [#allocation3], 0 }
   0x7   :  { %12 = vsyncpa [#allocation3 + $0x1], 0 }
   0x8   :  { %13 = vsyncpa [#allocation6], 0 }
   0x9   :  { %15 = vsyncpa [#allocation6 + $0x1], 0 }
   0xa   :  { %16 = vsyncpa [#allocation9], 0 }
   0xb   :  { %17 = vsyncpa [#allocation4], 0 }
   0xc   :  { %19 = vsyncpa [#allocation4 + $0x1], 0  ;;  %s1587_s18 = smov 0   ;;  %s1589_s19 = smov 0  }
   0xd   :  { %s1591_s20 = smov 0   ;;  %s1593_s21 = smov 0  }
   0xe   :  { %s1595_s22 = smov 0   ;;  %s1597_s23 = smov 0  }
   0xf   :  { %s1599_s24 = smov 0   ;;  %s1601_s25 = smov 0  }
  0x10   :  { %s1603_s26 = smov 0   ;;  %s1605_s27 = smov 0  }
  0x11   :  { %s1607_s28 = smov 0  }
  0x12 LB: > { %1908 = sst [smem:[#allocation17_spill]] %s1508_s18  ;;  %s1643_s29 = sadd.s32 4294967295, %s1548_s28   ;;  %s1548_s28 = sphi %s1607_s28, %s25_s28   ;;  %s1544_s27 = sphi %s1605_s27, %s1951_s27   ;;  %s1540_s26 = sphi %s1603_s26, %s1943_s26   ;;  %s1536_s25 = sphi %s1601_s25, %s1950_s25   ;;  %s1532_s24 = sphi %s1599_s24, %s1942_s24   ;;  %s1528_s23 = sphi %s1597_s23, %s1949_s23   ;;  %s1524_s22 = sphi %s1595_s22, %s1948_s22   ;;  %s1520_s21 = sphi %s1593_s21, %s1947_s21   ;;  %s1516_s20 = sphi %s1591_s20, %s1946_s20   ;;  %s1512_s19 = sphi %s1589_s19, %s1945_s19   ;;  %s1508_s18 = sphi %s1587_s18, %s1944_s18  }
  0x13   : > { %1909 = sst [smem:[#allocation18_spill]] %s1512_s19  ;;  %s1031_s30 = sadd.s32 4294967294, %s1548_s28  }
  0x14   : > { %1910 = sst [smem:[#allocation19_spill]] %s1532_s24  ;;  %p58_p0 = scmp.eq.s32.totalorder %s1643_s29, 0 }
  0x15   : > { %1911 = sst [smem:[#allocation20_spill]] %s1536_s25  ;;  %p85_p1 = scmp.ne.s32.totalorder %s1512_s19, %s1508_s18 }
  0x16   : > { %1912 = sst [smem:[#allocation21_spill]] %s1540_s26  ;;  %p174_p2 = scmp.eq.s32.totalorder %s1643_s29, 3 }
  0x17   : > { %p180_p3 = scmp.eq.s32.totalorder %s1031_s30, 3  ;;  %p1652_p4 = por %p85_p1, %p58_p0 }
  0x18   : > { %p1032_p5 = scmp.ge.s32.totalorder %s1548_s28, 1  ;;  %p187_p7 = scmp.lt.s32.totalorder %s1548_s28, 5 }
  0x19   : > { %s1913_s6 = scalar_select %p1652_p4, 1, 0 }
  0x1a   : > { %p1657_p6 = por %p180_p3, %p85_p1  ;;  %s1917_s2 = sld [smem:[#allocation27_spill]] }
  0x1b   : > { %1914 = sst [smem:[#allocation22_spill]] %s1913_s6  ;;  %p1665_p8 = pnand %p1032_p5, %p187_p7 }
  0x1c   : > { %s1915_s7 = scalar_select %p1657_p6, 1, 0 }
  0x1d   : > { %p1132_p9 = pneg %p1665_p8  ;;  %s1550_s12 = smov [#allocation7]  }
  0x1e   : > { %1916 = sst [smem:[#allocation23_spill]] %s1915_s7  ;;  %s200_s13 = sshll.u32 %s1550_s12, 4  ;;  %s201_s13 = int_to_ptr.vmem [resolvable:$true] %s200_s13 }
  0x1f   : > { %p1673_p10 = pnand %p1132_p9, %p58_p0  ;;  %s1920_s3 = sld [smem:[#allocation28_spill]] }
  0x20   : > { %s198_s10 = sshll.u32 %s1917_s2, 4  ;;  %s1888_s30 = smov 128   ;;  %s199_s10 = int_to_ptr.hbm [resolvable:$true] %s198_s10 }
  0x21   : > { %s1892_s8 = smov 8   ;;  %s1553_s9 = smov [#allocation8]  }
  0x22   : > { %1135 = dma.hbm_to_vmem [thread:$0]  (!%p1673_p10), %s199_s10, 18432, %s201_s13, [#allocation6], %s1888_s30, %s1888_s30, %s1892_s8  }
  0x23   : > { %s214_s12 = sshll.u32 %s1553_s9, 4  ;;  %s1921_s4 = sld [smem:[#allocation29_spill]]  ;;  %s215_s12 = int_to_ptr.vmem [resolvable:$true] %s214_s12 }
  0x24   : > { %s1554_s10 = smov [#allocation10]   ;;  %s37_s9 = sadd.s32 1, %s1544_s27 }
  0x25   : > { %s212_s17 = sshll.u32 %s1920_s3, 4  ;;  %s229_s13 = sshll.u32 %s1554_s10, 4  ;;  %s213_s17 = int_to_ptr.hbm [resolvable:$true] %s212_s17  ;;  %s230_s13 = int_to_ptr.vmem [resolvable:$true] %s229_s13 }
  0x26   : > { %1138 = dma.hbm_to_vmem [thread:$0]  (!%p1673_p10), %s213_s17, 2048, %s215_s12, [#allocation9], %s1888_s30, %s1888_s30, %s1892_s8  }
  0x27   : > { %p51_p11 = scmp.ne.s32.totalorder %s1528_s23, %s1524_s22  ;;  %p52_p12 = scmp.eq.s32.totalorder %s1548_s28, 0 }
  0x28   : > { %p57_p13 = scmp.ne.s32.totalorder %s1524_s22, %s1520_s21  ;;  %p1156_p1 = scmp.lt.s32.totalorder %s1548_s28, 4 }
  0x29   : > { %s227_s2 = sshll.u32 %s1921_s4, 4  ;;  %s240_s15 = sand.u32 1, %s1528_s23   ;;  %s228_s2 = int_to_ptr.hbm [resolvable:$true] %s227_s2 }
  0x2a   : > { %1141 = dma.hbm_to_vmem [thread:$0]  (!%p1673_p10), %s228_s2, 64, %s230_s13, [#allocation9]  }
  0x2b   : > { %p53_p3 = por %p52_p12, %p51_p11  ;;  %p1708_p5 = por %p58_p0, %p57_p13 }
  0x2c   : > { %s1111_s2 = smul.u32 40, %s240_s15  ;;  %s1923_s0 = sld [smem:[#allocation26_spill]] }
  0x2d   : > { %s1112_s14 = smul.u32 40, %s1544_s27  ;;  %p1143_p7 = pnand %p1156_p1, %p53_p3 }
  0x2e   : > { %s244_s10 = scalar_lea.vmem [#allocation2], %s1111_s2  ;;  %s241_s30 = scalar_lea.sflag [#allocation3], %s240_s15 }
  0x2f   : > { %s252_s13 = sshll.u32 %s244_s10, 4  ;;  %s1924_s4 = smov 128   ;;  %s253_s13 = int_to_ptr.vmem [resolvable:$true] %s252_s13 }
  0x30   : > { %s72_s7 = sadd.s32 1, %s1516_s20  ;;  %s34_s18 = sadd.s32 1, %s1540_s26 }
  0x31   : > { %p79_p9 = scmp.ne.s32.totalorder %s1516_s20, %s1512_s19  ;;  %p35_p10 = scmp.ge.s32.totalorder %s34_s18, 2 }
  0x32   : > { %s249_s16 = scalar_lea.hbm %s1923_s0, %s1112_s14  ;;  %s262_s14 = sand.u32 1, %s1548_s28  }
  0x33   : > { %s250_s3 = sshll.u32 %s249_s16, 4  ;;  %p1728_p11 = por %p79_p9, %p52_p12  ;;  %s251_s3 = int_to_ptr.hbm [resolvable:$true] %s250_s3 }
  0x34   : > { %1145 = dma.hbm_to_vmem [thread:$0]  (!%p1143_p7), %s251_s3, 640, %s253_s13, %s241_s30, %s1924_s4, %s1924_s4, %s1892_s8  }
  0x35   : > { %p1734_p13 = por %p174_p2, %p79_p9  ;;  %s1953_s18 = smov (%p35_p10, %s34_s18), 0 }
  0x36   : > { %1928 = sst [smem:[#allocation25_spill]] %s1953_s18  ;;  %s1955_s9 = smov (!%p35_p10, %s37_s9), %s1544_s27 }
  0x37   : > { %s1926_s21 = scalar_select %p1734_p13, 1, 0 }
  0x38   : > { %s68_s3 = ssub.s32 %s1540_s26, %s1953_s18  ;;  %p39_p3 = scmp.ge.s32.totalorder %s1955_s9, 2 }
  0x39   : > { %1927 = sst [smem:[#allocation24_spill]] %s1926_s21  ;;  %s264_s30 = sand.u32 1, %s1516_s20  }
  0x3a   : > { %s1038_s15 = sshll.u32 %s264_s30, 4  ;;  %s1039_s12 = sshll.u32 %s1540_s26, 1 }
  0x3b   : > { %s1957_s9 = smov (%p39_p3, %s1955_s9), 0  ;;  %s1040_s16 = sshll.u32 %s1544_s27, 2 }
  0x3c   : > { %s41_s10 = ssub.s32 %s1544_s27, %s1957_s9  ;;  %s271_s13 = sadd.s32 %s1040_s16, %s1039_s12 }
  0x3d   : > { %p42_p2 = scmp.eq.s32.totalorder %s41_s10, 0  ;;  %s69_s8 = sor.u32 %s68_s3, %s41_s10 }
  0x3e   : > { %p70_p12 = scmp.eq.s32.totalorder %s69_s8, 0  ;;  %s1041_s0 = sshll.u32 %s271_s13, 3 }
  0x3f   : > { %s1929_s21 = sadd.s32 1, %s1528_s23  ;;  %s273_s26 = scalar_lea.hbm %s1883_s1, %s1041_s0 }
  0x40   : > { %s1753_s5 = scalar_select %p42_p2, %s1528_s23, %s1929_s21  }
  0x41   : > { %s1756_s18 = scalar_select %p70_p12, %s1516_s20, %s72_s7  }
  0x42   : > { %s266_s24 = scalar_lea.vmem [#allocation5], %s1038_s15  ;;  %s274_s19 = sshll.u32 %s273_s26, 4  ;;  %s275_s19 = int_to_ptr.hbm [resolvable:$true] %s274_s19 }
  0x43   : > { %s276_s6 = sshll.u32 %s266_s24, 4  ;;  %p1146_p7 = pnand %p1156_p1, %p1728_p11  ;;  %s277_s6 = int_to_ptr.vmem [resolvable:$true] %s276_s6 }
  0x44   : > { %s263_s3 = scalar_lea.sflag [#allocation6], %s262_s14  ;;  %s1930_s8 = smov 8  }
  0x45   : > { %1148 = dma.hbm_to_vmem [thread:$0]  (!%p1146_p7), %s275_s19, 256, %s277_s6, %s263_s3, %s1924_s4, %s1924_s4, %s1930_s8  }
  0x46   : > { %288 = sbr.rel (%p1665_p8) target bundleno = 731 (0x2db), region = 40  ;;  %s290_s25 = sand.u32 (!%p1665_p8), 1, %s1524_s22  }
  0x47   : > { %s1771_s0 = smul.u32 (!%p1665_p8), 40, %s290_s25  ;;  %s291_s24 = scalar_lea.sflag (!%p1665_p8), [#allocation3], %s290_s25 }
  0x49   : > { %s294_s26 = scalar_lea.vmem (!%p1665_p8), [#allocation2], %s1771_s0 }
  0x4b   : > { %1487 = dma.done.wait (%p1708_p5), %s291_s24, 640  }
  0x4c   : > { %1489 = vsyncadd (%p1708_p5), %s291_s24, 4294966656  ;;  %s1931_s7 = sld [smem:[#allocation18_spill]]  ;;  %s300_s19 = sand.u32 1, %s1643_s29  }
  0x4d   : > { %s301_s14 = scalar_lea.sflag [#allocation6], %s300_s19 }
  0x52   : > { %s302_s6 = sand.u32 1, %s1931_s7  }
  0x53   : > { %s1782_s11 = sshll.u32 %s302_s6, 4 }
  0x54   : > { %s304_s2 = scalar_lea.vmem [#allocation5], %s1782_s11 }
  0x55   : > { %1491 = dma.done.wait (%p1652_p4), %s301_s14, 256  }
  0x56   : > { %1493 = vsyncadd (%p1652_p4), %s301_s14, 4294967040 }
  0x57   : > { %1495 = dma.done.wait (%p58_p0), [#allocation6], 18432  }
  0x58   : > { %1497 = vsyncadd (%p58_p0), [#allocation6], 4294948864 }
  0x59   : > { %1499 = dma.done.wait (%p58_p0), [#allocation9], 2112  }
  0x5a   : > { %1501 = vsyncadd (%p58_p0), [#allocation9], 4294965184  ;;  %v409_v0 = vld [vmem:[#allocation7 + $0x78] sm:$0xff]  ;;  %v408_v2 = vld [vmem:[#allocation7 + $0x70] sm:$0xff]  ;;  %s1933_s29 = sld [smem:[#allocation19_spill]]  ;;  %s351_s13 = scalar_lea.vmem [#allocation11], %s1782_s11 }
  0x5b   : > { %v441_v1 = vld [vmem:[#allocation7 + $0x178] sm:$0xff]  ;;  %539 = vmatpush.msra.mxu0 %v409_v0  ;;  %v440_v3 = vld [vmem:[#allocation7 + $0x170] sm:$0xff]  ;;  %v407_v4 = vld [vmem:[#allocation7 + $0x68] sm:$0xff]  ;;  %s1934_s15 = sld [smem:[#allocation20_spill]]  ;;  %s860_s4 = sshll.u32 %s351_s13, 4  ;;  %s861_s4 = int_to_ptr.vmem [resolvable:$true] %s860_s4 }
  0x5c   : > { %585 = vmatpush.msra.mxu2 %v441_v1  ;;  %v439_v5 = vld [vmem:[#allocation7 + $0x168] sm:$0xff]  ;;  %v406_v6 = vld [vmem:[#allocation7 + $0x60] sm:$0xff]  ;;  %v457_v7 = vld [vmem:[#allocation7 + $0x1f8] sm:$0xff]  ;;  %s1935_s25 = sld [smem:[#allocation30_spill]]  ;;  %s846_s11 = scalar_lea.sflag [#allocation4], %s302_s6 }
  0x5d   : > { %540 = vmatpush.msra.mxu0 %v408_v2  ;;  %v438_v8 = vld [vmem:[#allocation7 + $0x160] sm:$0xff]  ;;  %608 = vmatpush.msra.mxu3 %v457_v7  ;;  %v425_v9 = vld [vmem:[#allocation7 + $0xf8] sm:$0xff]  ;;  %v456_v10 = vld [vmem:[#allocation7 + $0x1f0] sm:$0xff] }
  0x5e   : > { %586 = vmatpush.msra.mxu2 %v440_v3  ;;  %v424_v11 = vld [vmem:[#allocation7 + $0xf0] sm:$0xff]  ;;  %v405_v12 = vld [vmem:[#allocation7 + $0x58] sm:$0xff]  ;;  %562 = vmatpush.msra.mxu1 %v425_v9  ;;  %v455_v14 = vld [vmem:[#allocation7 + $0x1e8] sm:$0xff] }
  0x5f   : > { %541 = vmatpush.msra.mxu0 %v407_v4  ;;  %v437_v13 = vld [vmem:[#allocation7 + $0x158] sm:$0xff]  ;;  %609 = vmatpush.msra.mxu3 %v456_v10  ;;  %v423_v15 = vld [vmem:[#allocation7 + $0xe8] sm:$0xff]  ;;  %v454_v16 = vld [vmem:[#allocation7 + $0x1e0] sm:$0xff] }
  0x60   : > { %587 = vmatpush.msra.mxu2 %v439_v5  ;;  %v404_v17 = vld [vmem:[#allocation7 + $0x50] sm:$0xff]  ;;  %563 = vmatpush.msra.mxu1 %v424_v11  ;;  %v422_v19 = vld [vmem:[#allocation7 + $0xe0] sm:$0xff]  ;;  %v453_v20 = vld [vmem:[#allocation7 + $0x1d8] sm:$0xff]  ;;  %s1048_s17 = sshll.u32 %s1933_s29, 4  ;;  %s1074_s12 = sshll.u32 %s1933_s29, 1 }
  0x61   : > { %542 = vmatpush.msra.mxu0 %v406_v6  ;;  %v436_v18 = vld [vmem:[#allocation7 + $0x150] sm:$0xff]  ;;  %610 = vmatpush.msra.mxu3 %v455_v14  ;;  %v403_v21 = vld [vmem:[#allocation7 + $0x48] sm:$0xff]  ;;  %v421_v23 = vld [vmem:[#allocation7 + $0xd8] sm:$0xff]  ;;  %s1800_s21 = scalar_lea.vmem %s294_s26, %s1048_s17 [#allocation2]  ;;  %s1075_s16 = sshll.u32 %s1934_s15, 2 }
  0x62   : > { %588 = vmatpush.msra.mxu2 %v438_v8  ;;  %v435_v22 = vld [vmem:[#allocation7 + $0x148] sm:$0xff]  ;;  %564 = vmatpush.msra.mxu1 %v423_v15  ;;  %v452_v24 = vld [vmem:[#allocation7 + $0x1d0] sm:$0xff]  ;;  %v402_v25 = vld [vmem:[#allocation7 + $0x40] sm:$0xff]  ;;  %s857_s10 = sadd.s32 %s1075_s16, %s1074_s12  ;;  %s1936_s0 = smov %s1935_s25 }
  0x63   : > { %543 = vmatpush.msra.mxu0 %v405_v12  ;;  %611 = vmatpush.msra.mxu3 %v454_v16  ;;  %v434_v26 = vld [vmem:[#allocation7 + $0x140] sm:$0xff]  ;;  %v420_v27 = vld [vmem:[#allocation7 + $0xd0] sm:$0xff]  ;;  %v451_v28 = vld [vmem:[#allocation7 + $0x1c8] sm:$0xff]  ;;  %s1076_s30 = sshll.u32 %s857_s10, 3 }
  0x64   : > { %589 = vmatpush.msra.mxu2 %v437_v13  ;;  %565 = vmatpush.msra.mxu1 %v422_v19  ;;  %v401_v29 = vld [vmem:[#allocation7 + $0x38] sm:$0xff]  ;;  %v419_v31 = vld [vmem:[#allocation7 + $0xc8] sm:$0xff]  ;;  %v450_v32 = vld [vmem:[#allocation7 + $0x1c0] sm:$0xff]  ;;  %s859_s24 = scalar_lea.hbm %s1935_s25, %s1076_s30 }
  0x65   : > { %544 = vmatpush.msra.mxu0 %v404_v17  ;;  %612 = vmatpush.msra.mxu3 %v453_v20  ;;  %v433_v30 = vld [vmem:[#allocation7 + $0x138] sm:$0xff]  ;;  %v400_v33 = vld [vmem:[#allocation7 + $0x30] sm:$0xff]  ;;  %v418_v35 = vld [vmem:[#allocation7 + $0xc0] sm:$0xff]  ;;  %s862_s19 = sshll.u32 %s859_s24, 4  ;;  %s863_s19 = int_to_ptr.hbm [resolvable:$true] %s862_s19 }
  0x66   : > { %590 = vmatpush.msra.mxu2 %v436_v18  ;;  %566 = vmatpush.msra.mxu1 %v421_v23  ;;  %v432_v34 = vld [vmem:[#allocation7 + $0x130] sm:$0xff]  ;;  %v449_v36 = vld [vmem:[#allocation7 + $0x1b8] sm:$0xff]  ;;  %v399_v37 = vld [vmem:[#allocation7 + $0x28] sm:$0xff]  ;;  %s1428_s14 = sshra.s32 %s863_s19, 4  ;;  %s1429_s14 = int_to_ptr.hbm [resolvable:$true] %s1428_s14 }
  0x67   : > { %545 = vmatpush.msra.mxu0 %v403_v21  ;;  %613 = vmatpush.msra.mxu3 %v452_v24  ;;  %v431_v38 = vld [vmem:[#allocation7 + $0x128] sm:$0xff]  ;;  %v417_v39 = vld [vmem:[#allocation7 + $0xb8] sm:$0xff]  ;;  %v448_v40 = vld [vmem:[#allocation7 + $0x1b0] sm:$0xff]  ;;  %p1435_p1 = scmp.lt.s32.totalorder %s1429_s14, %s1936_s0 }
  0x68   : > { %591 = vmatpush.msra.mxu2 %v435_v22  ;;  %567 = vmatpush.msra.mxu1 %v420_v27  ;;  %v398_v41 = vld [vmem:[#allocation7 + $0x20] sm:$0xff]  ;;  %v416_v43 = vld [vmem:[#allocation7 + $0xb0] sm:$0xff]  ;;  %v447_v44 = vld [vmem:[#allocation7 + $0x1a8] sm:$0xff] }
  0x69   : > { %546 = vmatpush.msra.mxu0 %v402_v25  ;;  %614 = vmatpush.msra.mxu3 %v451_v28  ;;  %v430_v42 = vld [vmem:[#allocation7 + $0x120] sm:$0xff]  ;;  %v397_v45 = vld [vmem:[#allocation7 + $0x18] sm:$0xff]  ;;  %v415_v47 = vld [vmem:[#allocation7 + $0xa8] sm:$0xff] }
  0x6a   : > { %592 = vmatpush.msra.mxu2 %v434_v26  ;;  %568 = vmatpush.msra.mxu1 %v419_v31  ;;  %v429_v46 = vld [vmem:[#allocation7 + $0x118] sm:$0xff]  ;;  %v446_v48 = vld [vmem:[#allocation7 + $0x1a0] sm:$0xff]  ;;  %v396_v49 = vld [vmem:[#allocation7 + $0x10] sm:$0xff] }
  0x6b   : > { %547 = vmatpush.msra.mxu0 %v401_v29  ;;  %615 = vmatpush.msra.mxu3 %v450_v32  ;;  %v428_v50 = vld [vmem:[#allocation7 + $0x110] sm:$0xff]  ;;  %v414_v51 = vld [vmem:[#allocation7 + $0xa0] sm:$0xff]  ;;  %v445_v52 = vld [vmem:[#allocation7 + $0x198] sm:$0xff] }
  0x6c   : > { %593 = vmatpush.msra.mxu2 %v433_v30  ;;  %569 = vmatpush.msra.mxu1 %v418_v35  ;;  %v395_v53 = vld [vmem:[#allocation7 + $0x8] sm:$0xff]  ;;  %v413_v55 = vld [vmem:[#allocation7 + $0x98] sm:$0xff]  ;;  %v444_v56 = vld [vmem:[#allocation7 + $0x190] sm:$0xff] }
  0x6d   : > { %548 = vmatpush.msra.mxu0 %v400_v33  ;;  %616 = vmatpush.msra.mxu3 %v449_v36  ;;  %v427_v54 = vld [vmem:[#allocation7 + $0x108] sm:$0xff]  ;;  %v394_v57 = vld [vmem:[#allocation7] sm:$0xff]  ;;  %v473_v59 = vld [vmem:[#allocation7 + $0x278] sm:$0xff] }
  0x6e   : > { %594 = vmatpush.msra.mxu2 %v432_v34  ;;  %570 = vmatpush.msra.mxu1 %v417_v39  ;;  %v426_v58 = vld [vmem:[#allocation7 + $0x100] sm:$0xff]  ;;  %v505_v60 = vld [vmem:[#allocation7 + $0x378] sm:$0xff]  ;;  %v412_v61 = vld [vmem:[#allocation7 + $0x90] sm:$0xff] }
  0x6f   : > { %549 = vmatpush.msra.mxu0 %v399_v37  ;;  %617 = vmatpush.msra.mxu3 %v448_v40  ;;  %v443_v62 = vld [vmem:[#allocation7 + $0x188] sm:$0xff]  ;;  %v472_v63 = vld [vmem:[#allocation7 + $0x270] sm:$0xff]  ;;  %v442_v2 = vld [vmem:[#allocation7 + $0x180] sm:$0xff] }
  0x70   : > { %595 = vmatpush.msra.mxu2 %v431_v38  ;;  %571 = vmatpush.msra.mxu1 %v416_v43  ;;  %v504_v0 = vld [vmem:[#allocation7 + $0x370] sm:$0xff]  ;;  %v411_v1 = vld [vmem:[#allocation7 + $0x88] sm:$0xff]  ;;  %v521_v5 = vld [vmem:[#allocation7 + $0x3f8] sm:$0xff] }
  0x71   : > { %550 = vmatpush.msra.mxu0 %v398_v41  ;;  %618 = vmatpush.msra.mxu3 %v447_v44  ;;  %v471_v3 = vld [vmem:[#allocation7 + $0x268] sm:$0xff]  ;;  %v410_v6 = vld [vmem:[#allocation7 + $0x80] sm:$0xff]  ;;  %v489_v9 = vld [vmem:[#allocation7 + $0x2f8] sm:$0xff] }
  0x72   : > { %596 = vmatpush.msra.mxu2 %v430_v42  ;;  %572 = vmatpush.msra.mxu1 %v415_v47  ;;  %v503_v4 = vld [vmem:[#allocation7 + $0x368] sm:$0xff]  ;;  %v470_v7 = vld [vmem:[#allocation7 + $0x260] sm:$0xff]  ;;  %v520_v10 = vld [vmem:[#allocation7 + $0x3f0] sm:$0xff] }
  0x73   : > { %551 = vmatpush.msra.mxu0 %v397_v45  ;;  %619 = vmatpush.msra.mxu3 %v446_v48  ;;  %v502_v8 = vld [vmem:[#allocation7 + $0x360] sm:$0xff]  ;;  %v469_v11 = vld [vmem:[#allocation7 + $0x258] sm:$0xff]  ;;  %v488_v13 = vld [vmem:[#allocation7 + $0x2f0] sm:$0xff] }
  0x74   : > { %597 = vmatpush.msra.mxu2 %v429_v46  ;;  %573 = vmatpush.msra.mxu1 %v414_v51  ;;  %v501_v12 = vld [vmem:[#allocation7 + $0x358] sm:$0xff]  ;;  %v519_v14 = vld [vmem:[#allocation7 + $0x3e8] sm:$0xff]  ;;  %v468_v15 = vld [vmem:[#allocation7 + $0x250] sm:$0xff] }
  0x75   : > { %552 = vmatpush.msra.mxu0 %v396_v49  ;;  %620 = vmatpush.msra.mxu3 %v445_v52  ;;  %v500_v16 = vld [vmem:[#allocation7 + $0x350] sm:$0xff]  ;;  %v487_v17 = vld [vmem:[#allocation7 + $0x2e8] sm:$0xff]  ;;  %v518_v18 = vld [vmem:[#allocation7 + $0x3e0] sm:$0xff] }
  0x76   : > { %598 = vmatpush.msra.mxu2 %v428_v50  ;;  %574 = vmatpush.msra.mxu1 %v413_v55  ;;  %v467_v19 = vld [vmem:[#allocation7 + $0x248] sm:$0xff]  ;;  %v486_v21 = vld [vmem:[#allocation7 + $0x2e0] sm:$0xff]  ;;  %v517_v22 = vld [vmem:[#allocation7 + $0x3d8] sm:$0xff] }
  0x77   : > { %553 = vmatpush.msra.mxu0 %v395_v53  ;;  %621 = vmatpush.msra.mxu3 %v444_v56  ;;  %v499_v20 = vld [vmem:[#allocation7 + $0x348] sm:$0xff]  ;;  %v466_v23 = vld [vmem:[#allocation7 + $0x240] sm:$0xff]  ;;  %v485_v25 = vld [vmem:[#allocation7 + $0x2d8] sm:$0xff] }
  0x78   : > { %599 = vmatpush.msra.mxu2 %v427_v54  ;;  %575 = vmatpush.msra.mxu1 %v412_v61  ;;  %v498_v24 = vld [vmem:[#allocation7 + $0x340] sm:$0xff]  ;;  %v516_v26 = vld [vmem:[#allocation7 + $0x3d0] sm:$0xff]  ;;  %v465_v27 = vld [vmem:[#allocation7 + $0x238] sm:$0xff] }
  0x79   : > { %554 = vmatpush.msra.mxu0 %v394_v57  ;;  %622 = vmatpush.msra.mxu3 %v443_v62  ;;  %v497_v28 = vld [vmem:[#allocation7 + $0x338] sm:$0xff]  ;;  %v484_v29 = vld [vmem:[#allocation7 + $0x2d0] sm:$0xff]  ;;  %v515_v30 = vld [vmem:[#allocation7 + $0x3c8] sm:$0xff] }
  0x7a   : > { %600 = vmatpush.msra.mxu2 %v426_v58  ;;  %576 = vmatpush.msra.mxu1 %v411_v1  ;;  %v464_v31 = vld [vmem:[#allocation7 + $0x230] sm:$0xff]  ;;  %v463_v33 = vld [vmem:[#allocation7 + $0x228] sm:$0xff]  ;;  %v514_v37 = vld [vmem:[#allocation7 + $0x3c0] sm:$0xff] }
  0x7b   : > { %631 = vmatpush.msrb.mxu0 %v473_v59  ;;  %623 = vmatpush.msra.mxu3 %v442_v2  ;;  %v496_v32 = vld [vmem:[#allocation7 + $0x330] sm:$0xff]  ;;  %v483_v35 = vld [vmem:[#allocation7 + $0x2c8] sm:$0xff]  ;;  %v462_v39 = vld [vmem:[#allocation7 + $0x220] sm:$0xff] }
  0x7c   : > { %677 = vmatpush.msrb.mxu2 %v505_v60  ;;  %577 = vmatpush.msra.mxu1 %v410_v6  ;;  %v1053_v34 = vld [vmem:[%s1800_s21 + $0x2] sm:$0xff]  ;;  %v495_v36 = vld [vmem:[#allocation7 + $0x328] sm:$0xff]  ;;  %v494_v40 = vld [vmem:[#allocation7 + $0x320] sm:$0xff] }
  0x7d   : > { %632 = vmatpush.msrb.mxu0 %v472_v63  ;;  %700 = vmatpush.msrb.mxu3 %v521_v5  ;;  %v356_v38 = vld [vmem:[%s1800_s21] sm:$0xff]  ;;  %v482_v42 = vld [vmem:[#allocation7 + $0x2c0] sm:$0xff]  ;;  %v461_v43 = vld [vmem:[#allocation7 + $0x218] sm:$0xff] }
  0x7e   : > { %678 = vmatpush.msrb.mxu2 %v504_v0  ;;  %654 = vmatpush.msrb.mxu1 %v489_v9  ;;  %v1056_v41 = vld [vmem:[%s1800_s21 + $0x3] sm:$0xff]  ;;  %v459_v51 = vld [vmem:[#allocation7 + $0x208] sm:$0xff]  ;;  %v458_v56 = vld [vmem:[#allocation7 + $0x200] sm:$0xff] }
  0x7f   : > { %633 = vmatpush.msrb.mxu0 %v471_v3  ;;  %701 = vmatpush.msrb.mxu3 %v520_v10  ;;  %v493_v44 = vld [vmem:[#allocation7 + $0x318] sm:$0xff]  ;;  %v460_v47 = vld [vmem:[#allocation7 + $0x210] sm:$0xff]  ;;  %v491_v52 = vld [vmem:[#allocation7 + $0x308] sm:$0xff] }
  0x80   : > { %679 = vmatpush.msrb.mxu2 %v503_v4  ;;  %655 = vmatpush.msrb.mxu1 %v488_v13  ;;  %v513_v45 = vld [vmem:[#allocation7 + $0x3b8] sm:$0xff]  ;;  %v492_v48 = vld [vmem:[#allocation7 + $0x310] sm:$0xff]  ;;  %v511_v54 = vld [vmem:[#allocation7 + $0x3a8] sm:$0xff] }
  0x81   : > { %634 = vmatpush.msrb.mxu0 %v470_v7  ;;  %702 = vmatpush.msrb.mxu3 %v519_v14  ;;  %v1050_v46 = vld [vmem:[%s1800_s21 + $0x1] sm:$0xff]  ;;  %v1054_v55 = vld [vmem:[%s1800_s21 + $0xa] sm:$0xff]  ;;  %v479_v58 = vld [vmem:[#allocation7 + $0x2a8] sm:$0xff] }
  0x82   : > { %680 = vmatpush.msrb.mxu2 %v502_v8  ;;  %656 = vmatpush.msrb.mxu1 %v487_v17  ;;  %v481_v49 = vld [vmem:[#allocation7 + $0x2b8] sm:$0xff]  ;;  %v512_v50 = vld [vmem:[#allocation7 + $0x3b0] sm:$0xff]  ;;  %v490_v57 = vld [vmem:[#allocation7 + $0x300] sm:$0xff] }
  0x83   : > { %635 = vmatpush.msrb.mxu0 %v469_v11  ;;  %703 = vmatpush.msrb.mxu3 %v518_v18  ;;  %v480_v53 = vld [vmem:[#allocation7 + $0x2b0] sm:$0xff]  ;;  %v510_v59 = vld [vmem:[#allocation7 + $0x3a0] sm:$0xff]  ;;  %v537_v60 = vld [vmem:[#allocation7 + $0x478] sm:$0xff] }
  0x84   : > { %681 = vmatpush.msrb.mxu2 %v501_v12  ;;  %657 = vmatpush.msrb.mxu1 %v486_v21  ;;  %v1808_v61 = vld [vmem:[%s1800_s21 + $0x8] sm:$0xff]  ;;  %v478_v63 = vld [vmem:[#allocation7 + $0x2a0] sm:$0xff]  ;;  %v536_v1 = vld [vmem:[#allocation7 + $0x470] sm:$0xff] }
  0x85   : > { %636 = vmatpush.msrb.mxu0 %v468_v15  ;;  %704 = vmatpush.msrb.mxu3 %v517_v22  ;;  %v1057_v62 = vld [vmem:[%s1800_s21 + $0xb] sm:$0xff]  ;;  %v508_v4 = vld [vmem:[#allocation7 + $0x390] sm:$0xff]  ;;  %v535_v5 = vld [vmem:[#allocation7 + $0x468] sm:$0xff] }
  0x86   : > { %682 = vmatpush.msrb.mxu2 %v500_v16  ;;  %658 = vmatpush.msrb.mxu1 %v485_v25  ;;  %v509_v0 = vld [vmem:[#allocation7 + $0x398] sm:$0xff]  ;;  %v476_v6 = vld [vmem:[#allocation7 + $0x290] sm:$0xff]  ;;  %v507_v7 = vld [vmem:[#allocation7 + $0x388] sm:$0xff] }
  0x87   : > { %637 = vmatpush.msrb.mxu0 %v467_v19  ;;  %705 = vmatpush.msrb.mxu3 %v516_v26  ;;  %v1051_v2 = vld [vmem:[%s1800_s21 + $0x9] sm:$0xff]  ;;  %v475_v10 = vld [vmem:[#allocation7 + $0x288] sm:$0xff]  ;;  %v532_v16 = vld [vmem:[#allocation7 + $0x450] sm:$0xff] }
  0x88   : > { %683 = vmatpush.msrb.mxu2 %v499_v20  ;;  %659 = vmatpush.msrb.mxu1 %v484_v29  ;;  %v477_v3 = vld [vmem:[#allocation7 + $0x298] sm:$0xff]  ;;  %v534_v8 = vld [vmem:[#allocation7 + $0x460] sm:$0xff]  ;;  %v531_v18 = vld [vmem:[#allocation7 + $0x448] sm:$0xff] }
  0x89   : > { %638 = vmatpush.msrb.mxu0 %v466_v23  ;;  %706 = vmatpush.msrb.mxu3 %v515_v30  ;;  %v1065_v9 = vld [vmem:[%s1800_s21 + $0x6] sm:$0xff]  ;;  %v506_v11 = vld [vmem:[#allocation7 + $0x380] sm:$0xff]  ;;  %v527_v26 = vld [vmem:[#allocation7 + $0x428] sm:$0xff] }
  0x8a   : > { %684 = vmatpush.msrb.mxu2 %v498_v24  ;;  %660 = vmatpush.msrb.mxu1 %v483_v35  ;;  %v533_v12 = vld [vmem:[#allocation7 + $0x458] sm:$0xff]  ;;  %v474_v15 = vld [vmem:[#allocation7 + $0x280] sm:$0xff]  ;;  %v528_v24 = vld [vmem:[#allocation7 + $0x430] sm:$0xff] }
  0x8b   : > { %639 = vmatpush.msrb.mxu0 %v465_v27  ;;  %601 = vmatmul.f32.vlgmr.msra.gmra.mxu2 %v1053_v34  ;;  %v1059_v13 = vld [vmem:[%s1800_s21 + $0x4] sm:$0xff]  ;;  %v530_v19 = vld [vmem:[#allocation7 + $0x440] sm:$0xff]  ;;  %v523_v30 = vld [vmem:[#allocation7 + $0x408] sm:$0xff] }
  0x8c   : > { %685 = vmatpush.msrb.mxu2 %v497_v28  ;;  %707 = vmatpush.msrb.mxu3 %v514_v37  ;;  %v1068_v14 = vld [vmem:[%s1800_s21 + $0x7] sm:$0xff]  ;;  %v1069_v23 = vld [vmem:[%s1800_s21 + $0xf] sm:$0xff]  ;;  %v761_v35 = vld [vmem:[#allocation8 + $0x68] sm:$0xff] }
  0x8d   : > { %640 = vmatpush.msrb.mxu0 %v464_v31  ;;  %624 = vmatmul.f32.vlgmr.msra.gmra.mxu3 %v1056_v41  ;;  %v1062_v17 = vld [vmem:[%s1800_s21 + $0x5] sm:$0xff]  ;;  %v1066_v20 = vld [vmem:[%s1800_s21 + $0xe] sm:$0xff] }
  0x8e   : > { %686 = vmatpush.msrb.mxu2 %v496_v32  ;;  %555 = vmatmul.f32.vlgmr.msra.gmra.mxu0 %v356_v38  ;;  %v529_v21 = vld [vmem:[#allocation7 + $0x438] sm:$0xff]  ;;  %v526_v27 = vld [vmem:[#allocation7 + $0x420] sm:$0xff]  ;;  %v524_v29 = vld [vmem:[#allocation7 + $0x410] sm:$0xff] }
  0x8f   : > { %641 = vmatpush.msrb.mxu0 %v463_v33  ;;  %661 = vmatpush.msrb.mxu1 %v482_v42  ;;  %v1060_v22 = vld [vmem:[%s1800_s21 + $0xc] sm:$0xff]  ;;  %v762_v34 = vld [vmem:[#allocation8 + $0x70] sm:$0xff] }
  0x90   : > { %687 = vmatpush.msrb.mxu2 %v495_v36  ;;  %708 = vmatpush.msrb.mxu3 %v513_v45  ;;  %v1063_v25 = vld [vmem:[%s1800_s21 + $0xd] sm:$0xff]  ;;  %v758_v38 = vld [vmem:[#allocation8 + $0x50] sm:$0xff] }
  0x91   : > { %642 = vmatpush.msrb.mxu0 %v462_v39  ;;  %578 = vmatmul.f32.vlgmr.msra.gmra.mxu1 %v1050_v46  ;;  %v525_v28 = vld [vmem:[#allocation7 + $0x418] sm:$0xff]  ;;  %v522_v31 = vld [vmem:[#allocation7 + $0x400] sm:$0xff]  ;;  %v757_v39 = vld [vmem:[#allocation8 + $0x48] sm:$0xff] }
  0x92   : > { %688 = vmatpush.msrb.mxu2 %v494_v40  ;;  %662 = vmatpush.msrb.mxu1 %v481_v49  ;;  %v1072_v32 = vld [vmem:[%s1800_s21 + $0x10] sm:$0xff]  ;;  %v763_v33 = vld [vmem:[#allocation8 + $0x78] sm:$0xff]  ;;  %v754_v42 = vld [vmem:[#allocation8 + $0x30] sm:$0xff]  ;;  %s1434_s21 = scalar_lea.hbm %s1936_s0, 64 }
  0x93   : > { %643 = vmatpush.msrb.mxu0 %v461_v43  ;;  %709 = vmatpush.msrb.mxu3 %v512_v50  ;;  %v760_v36 = vld [vmem:[#allocation8 + $0x60] sm:$0xff]  ;;  %v759_v37 = vld [vmem:[#allocation8 + $0x58] sm:$0xff]  ;;  %v750_v49 = vld [vmem:[#allocation8 + $0x10] sm:$0xff] }
  0x94   : > { %689 = vmatpush.msrb.mxu2 %v493_v44  ;;  %663 = vmatpush.msrb.mxu1 %v480_v53  ;;  %v756_v40 = vld [vmem:[#allocation8 + $0x40] sm:$0xff]  ;;  %v755_v41 = vld [vmem:[#allocation8 + $0x38] sm:$0xff]  ;;  %v753_v44 = vld [vmem:[#allocation8 + $0x28] sm:$0xff] }
  0x95   : > { %644 = vmatpush.msrb.mxu0 %v460_v47  ;;  %710 = vmatpush.msrb.mxu3 %v511_v54  ;;  %v752_v45 = vld [vmem:[#allocation8 + $0x20] sm:$0xff]  ;;  %v751_v46 = vld [vmem:[#allocation8 + $0x18] sm:$0xff] }
  0x96   : > { %690 = vmatpush.msrb.mxu2 %v492_v48  ;;  %664 = vmatpush.msrb.mxu1 %v479_v58  ;;  %v1256_v48 = vld [vmem:[#allocation10] ss:$0 sm:$0xff] }
  0x97   : > { %645 = vmatpush.msrb.mxu0 %v459_v51  ;;  %604 = vmatmul.f32.gmra.mxu2 %v1054_v55  ;;  %v749_v51 = vld [vmem:[#allocation8 + $0x8] sm:$0xff]  ;;  %v748_v54 = vld [vmem:[#allocation8] sm:$0xff] }
  0x98   : > { %691 = vmatpush.msrb.mxu2 %v491_v52  ;;  %711 = vmatpush.msrb.mxu3 %v510_v59 }
  0x99   : > { %646 = vmatpush.msrb.mxu0 %v458_v56  ;;  %627 = vmatmul.f32.gmra.mxu3 %v1057_v62 }
  0x9a   : > { %692 = vmatpush.msrb.mxu2 %v490_v57  ;;  %558 = vmatmul.f32.gmra.mxu0 %v1808_v61 }
  0x9b   : > { %723 = vmatpush.msra.mxu0 %v537_v60  ;;  %665 = vmatpush.msrb.mxu1 %v478_v63 }
  0x9c   : > { %1079 = vmatpush.msra.mxu2 %v537_v60  ;;  %712 = vmatpush.msrb.mxu3 %v509_v0 }
  0x9d   : > { %724 = vmatpush.msra.mxu0 %v536_v1  ;;  %581 = vmatmul.f32.gmra.mxu1 %v1051_v2 }
  0x9e   : > { %1080 = vmatpush.msra.mxu2 %v536_v1  ;;  %666 = vmatpush.msrb.mxu1 %v477_v3 }
  0x9f   : > { %713 = vmatpush.msrb.mxu3 %v508_v4  ;;  %725 = vmatpush.msra.mxu0 %v535_v5 }
  0xa0   : > { %1081 = vmatpush.msra.mxu2 %v535_v5  ;;  %667 = vmatpush.msrb.mxu1 %v476_v6 }
  0xa1   : > { %714 = vmatpush.msrb.mxu3 %v507_v7  ;;  %726 = vmatpush.msra.mxu0 %v534_v8 }
  0xa2   : > { %1082 = vmatpush.msra.mxu2 %v534_v8  ;;  %668 = vmatpush.msrb.mxu1 %v475_v10 }
  0xa3   : > { %693 = vmatmul.f32.vlgmr.msrb.gmra.mxu2 %v1065_v9  ;;  %715 = vmatpush.msrb.mxu3 %v506_v11 }
  0xa4   : > { %727 = vmatpush.msra.mxu0 %v533_v12  ;;  %1083 = vmatpush.msra.mxu2 %v533_v12 }
  0xa5   : > { %647 = vmatmul.f32.vlgmr.msrb.gmra.mxu0 %v1059_v13  ;;  %716 = vmatmul.f32.vlgmr.msrb.gmra.mxu3 %v1068_v14 }
  0xa6   : > { %669 = vmatpush.msrb.mxu1 %v474_v15  ;;  %728 = vmatpush.msra.mxu0 %v532_v16 }
  0xa7   : > { %1084 = vmatpush.msra.mxu2 %v532_v16  ;;  %670 = vmatmul.f32.vlgmr.msrb.gmra.mxu1 %v1062_v17 }
  0xa8   : > { %729 = vmatpush.msra.mxu0 %v531_v18  ;;  %765 = vmatpush.msra.mxu1 %v763_v33 }
  0xa9   : > { %1085 = vmatpush.msra.mxu2 %v531_v18  ;;  %1095 = vmatpush.msra.mxu3 %v763_v33  ;;  %v800_v33 = vlaneseq }
  0xaa   : > { %730 = vmatpush.msra.mxu0 %v530_v19  ;;  %766 = vmatpush.msra.mxu1 %v762_v34 }
  0xab   : > { %1086 = vmatpush.msra.mxu2 %v530_v19  ;;  %1096 = vmatpush.msra.mxu3 %v762_v34  ;;  %v801_v34 = vand.u32 127, %v800_v33 }
  0xac   : > { %696 = vmatmul.f32.gmra.mxu2 %v1066_v20  ;;  %731 = vmatpush.msra.mxu0 %v529_v21 }
  0xad   : > { %1087 = vmatpush.msra.mxu2 %v529_v21  ;;  %650 = vmatmul.f32.gmra.mxu0 %v1060_v22  ;;  %vm802_vm0 = vcmp.lt.s32.totalorder %v801_v34, 32 }
  0xae   : > { %719 = vmatmul.f32.gmra.mxu3 %v1069_v23  ;;  %732 = vmatpush.msra.mxu0 %v528_v24 }
  0xaf   : > { %1088 = vmatpush.msra.mxu2 %v528_v24  ;;  %673 = vmatmul.f32.gmra.mxu1 %v1063_v25  ;;  %v1257_v24 = vld [vmem:[#allocation10 + $0x1] ss:$0 sm:$0xff] }
  0xb0   : > { %733 = vmatpush.msra.mxu0 %v527_v26  ;;  %767 = vmatpush.msra.mxu1 %v761_v35 }
  0xb1   : > { %1089 = vmatpush.msra.mxu2 %v527_v26  ;;  %1097 = vmatpush.msra.mxu3 %v761_v35  ;;  %v788_v26 = vld [vmem:[%s304_s2] sm:$0xff] }
  0xb2   : > { %734 = vmatpush.msra.mxu0 %v526_v27  ;;  %768 = vmatpush.msra.mxu1 %v760_v36 }
  0xb3   : > { %1090 = vmatpush.msra.mxu2 %v526_v27  ;;  %1098 = vmatpush.msra.mxu3 %v760_v36 }
  0xb4   : > { %735 = vmatpush.msra.mxu0 %v525_v28  ;;  %769 = vmatpush.msra.mxu1 %v759_v37 }
  0xb5   : > { %1091 = vmatpush.msra.mxu2 %v525_v28  ;;  %1099 = vmatpush.msra.mxu3 %v759_v37 }
  0xb6   : > { %736 = vmatpush.msra.mxu0 %v524_v29  ;;  %770 = vmatpush.msra.mxu1 %v758_v38 }
  0xb7   : > { %1092 = vmatpush.msra.mxu2 %v524_v29  ;;  %1100 = vmatpush.msra.mxu3 %v758_v38 }
  0xb8   : > { %737 = vmatpush.msra.mxu0 %v523_v30  ;;  %771 = vmatpush.msra.mxu1 %v757_v39 }
  0xb9   : > { %1093 = vmatpush.msra.mxu2 %v523_v30  ;;  %1101 = vmatpush.msra.mxu3 %v757_v39  ;;  %v789_v30 = vld [vmem:[%s304_s2 + $0x8] sm:$0xff]  ;;  %s1430_s2 = scalar_lea.hbm %s1429_s14, 16 }
  0xba   : > { %738 = vmatpush.msra.mxu0 %v522_v31  ;;  %772 = vmatpush.msra.mxu1 %v756_v40  ;;  %p1431_p0 = scmp.ne.s32.totalorder %s1429_s14, %s1430_s2  ;;  %p1436_p5 = scmp.lt.s32.totalorder %s1434_s21, %s1430_s2 }
  0xbb   : > { %1094 = vmatpush.msra.mxu2 %v522_v31  ;;  %739 = vmatmul.f32.vlgmr.msra.gmra.mxu0 %v1808_v61 }
  0xbc   : > { %742 = vmatmul.f32.vlgmr.msra.gmra.mxu2 %v1072_v32  ;;  %1102 = vmatpush.msra.mxu3 %v756_v40  ;;  %p1432_p4 = pnand %p1431_p0, %p1734_p13  ;;  %p1437_p9 = por %p1436_p5, %p1435_p1 }
  0xbd   : > { %773 = vmatpush.msra.mxu1 %v755_v41 }
  0xbe   : > { %1103 = vmatpush.msra.mxu3 %v755_v41  ;;  %p1433_p8 = pneg %p1432_p4 }
  0xbf   : > { %774 = vmatpush.msra.mxu1 %v754_v42 }
  0xc0   : > { %1104 = vmatpush.msra.mxu3 %v754_v42  ;;  %p1438_p10 = pnand %p1437_p9, %p1433_p8 }
  0xc1   : > { %775 = vmatpush.msra.mxu1 %v753_v44 }
  0xc2   : > { %1105 = vmatpush.msra.mxu3 %v753_v44 }
  0xc3   : > { %776 = vmatpush.msra.mxu1 %v752_v45 }
  0xc4   : > { %1106 = vmatpush.msra.mxu3 %v752_v45 }
  0xc5   : > { %777 = vmatpush.msra.mxu1 %v751_v46 }
  0xc6   : > { %1107 = vmatpush.msra.mxu3 %v751_v46 }
  0xc7   : > { %778 = vmatpush.msra.mxu1 %v750_v49 }
  0xc8   : > { %1108 = vmatpush.msra.mxu3 %v750_v49 }
  0xc9   : > { %779 = vmatpush.msra.mxu1 %v749_v51 }
  0xca   : > { %1109 = vmatpush.msra.mxu3 %v749_v51 }
  0xcb   : > { %780 = vmatpush.msra.mxu1 %v748_v54 }
  0xcc   : > { %1110 = vmatpush.msra.mxu3 %v748_v54 }
 0x10b   : > { %v556_v43 = vpop.f32.mrf.mxu0 }
 0x10c   : > { %v557_v53 = vadd.f32 %v1256_v48, %v556_v43 }
 0x10e   : > { %v579_v47 = vpop.f32.mrf.mxu1  ;;  %v602_v50 = vpop.f32.mrf.mxu2 }
 0x10f   : > { %v580_v57 = vadd.f32 %v579_v47, %v557_v53 }
 0x110   : > { %v625_v55 = vpop.f32.mrf.mxu3 }
 0x111   : > { %v603_v60 = vadd.f32 %v602_v50, %v580_v57  ;;  %v1258_v57 = vld [vmem:[#allocation10 + $0x2] ss:$0 sm:$0xff] }
 0x113   : > { %v626_v0 = vadd.f32 %v625_v55, %v603_v60  ;;  %v1259_v60 = vld [vmem:[#allocation10 + $0x3] ss:$0 sm:$0xff] }
 0x117   : > { %v559_v52 = vpop.f32.mrf.mxu0 }
 0x118   : > { %v560_v58 = vadd.f32 %v1256_v48, %v559_v52 }
 0x11a   : > { %v582_v56 = vpop.f32.mrf.mxu1  ;;  %v605_v59 = vpop.f32.mrf.mxu2 }
 0x11b   : > { %v583_v62 = vadd.f32 %v582_v56, %v560_v58 }
 0x11c   : > { %v628_v63 = vpop.f32.mrf.mxu3 }
 0x11d   : > { %v606_v2 = vadd.f32 %v605_v59, %v583_v62 }
 0x11f   : > { %v629_v5 = vadd.f32 %v628_v63, %v606_v2 }
 0x122   : > { %v648_v61 = vpop.f32.mrf.mxu0 }
 0x123   : > { %v649_v3 = vadd.f32 %v648_v61, %v626_v0 }
 0x124   : > { %v671_v1 = vpop.f32.mrf.mxu1 }
 0x125   : > { %v672_v7 = vadd.f32 %v671_v1, %v649_v3 }
 0x126   : > { %v694_v4 = vpop.f32.mrf.mxu2 }
 0x127   : > { %v695_v11 = vadd.f32 %v694_v4, %v672_v7 }
 0x128   : > { %v717_v8 = vpop.f32.mrf.mxu3 }
 0x129   : > { %v718_v14 = vadd.f32 %v717_v8, %v695_v11 }
 0x12a   : > { %v651_v6 = vpop.f32.mrf.mxu0 }
 0x12b   : > { %v652_v9 = vadd.f32 %v651_v6, %v629_v5 }
 0x12c   : > { %v674_v10 = vpop.f32.mrf.mxu1 }
 0x12d   : > { %v675_v12 = vadd.f32 %v674_v10, %v652_v9 }
 0x12f   : > { %v697_v13 = vpop.f32.mrf.mxu2 }
 0x130   : > { %v698_v16 = vadd.f32 %v697_v13, %v675_v12 }
 0x131   : > { %v720_v18 = vpop.f32.mrf.mxu3 }
 0x132   : > { %v721_v20 = vadd.f32 %v720_v18, %v698_v16 }
 0x138   : > { %v740_v15 = vpop.f32.mrf.mxu0 }
 0x139   : > { %v741_v17 = vadd.f32 %v740_v15, %v718_v14 }
 0x13b   : > { %v746_v19 = vmax.f32 %v741_v17, 0.0 }
 0x13d   : > { %781 = vmatmul.f32.vlgmr.msra.gmra.mxu1 %v746_v19 }
 0x13f   : > { %v743_v21 = vpop.f32.mrf.mxu2 }
 0x140   : > { %v744_v22 = vadd.f32 %v743_v21, %v721_v20 }
 0x142   : > { %v747_v23 = vmax.f32 %v744_v22, 0.0 }
 0x144   : > { %784 = vmatmul.f32.vlgmr.msra.gmra.mxu3 %v747_v23 }
 0x1ba   : > { %v782_v25 = vpop.f32.mrf.mxu1 }
 0x1bb   : > { %v783_v27 = vadd.f32 %v1257_v24, %v782_v25 }
 0x1bd   : > { %v790_v28 = vadd.f32 %v788_v26, %v783_v27 }
 0x1bf   : > { %792 = vadd.xlane.f32.xlu0 %v790_v28 }
 0x1c7   : > { %v785_v29 = vpop.f32.mrf.mxu3 }
 0x1c8   : > { %v786_v31 = vadd.f32 %v1257_v24, %v785_v29 }
 0x1ca   : > { %v791_v32 = vadd.f32 %v789_v30, %v786_v31 }
 0x1cc   : > { %794 = vadd.xlane.f32.xlu0 %v791_v32 }
 0x232   : > { %v793_v35 = vpop.xlane.xlu0 %792 }
 0x233   : > { %v796_v36 = vmul.f32 0.03125, %v793_v35 }
 0x235   : > { %v798_v37 = vsub.f32 %v790_v28, %v796_v36 }
 0x237   : > { %v803_v38 = vsel %vm802_vm0, %v798_v37, 0.0 }
 0x238   : > { %v805_v39 = vmul.f32 %v803_v38, %v803_v38 }
 0x23a   : > { %807 = vadd.xlane.f32.xlu1 %v805_v39 }
 0x23f   : > { %v795_v40 = vpop.xlane.xlu0 %794 }
 0x240   : > { %v797_v41 = vmul.f32 0.03125, %v795_v40 }
 0x242   : > { %v799_v42 = vsub.f32 %v791_v32, %v797_v41 }
 0x244   : > { %v804_v43 = vsel %vm802_vm0, %v799_v42, 0.0 }
 0x245   : > { %v806_v44 = vmul.f32 %v804_v43, %v804_v43 }
 0x247   : > { %809 = vadd.xlane.f32.xlu1 %v806_v44 }
 0x2ad   : > { %v808_v45 = vpop.xlane.xlu1 %807 }
 0x2ae   : > { %v811_v46 = vmul.f32 0.03125, %v808_v45 }
 0x2b0   : > { %v813_v47 = vadd.f32 1e-05, %v811_v46 }
 0x2b2   : > { %1260 = vrsqrt.f32 %v813_v47  ;;  %vm821_vm2 = vweird.f32 %v813_v47 }
 0x2b8   : > { %v1261_v48 = vpop.eup %1260 }
 0x2b9   : > { %v816_v49 = vmul.f32 %v1261_v48, %v813_v47  ;;  %vm822_vm1 = vweird.f32 %v1261_v48 }
 0x2ba   : > { %v810_v50 = vpop.xlane.xlu1 %809  ;;  %vm823_vm3 = vmor %vm821_vm2, %vm822_vm1 }
 0x2bb   : > { %v812_v51 = vmul.f32 0.03125, %v810_v50  ;;  %v817_v52 = vmul.f32 %v1261_v48, %v816_v49 }
 0x2bd   : > { %v814_v53 = vadd.f32 1e-05, %v812_v51  ;;  %v818_v54 = vmul.f32 0.5, %v817_v52 }
 0x2bf   : > { %1262 = vrsqrt.f32 %v814_v53  ;;  %v819_v55 = vsub.f32 1.5, %v818_v54  ;;  %vm831_vm5 = vweird.f32 %v814_v53 }
 0x2c1   : > { %v820_v56 = vmul.f32 %v1261_v48, %v819_v55 }
 0x2c3   : > { %v824_v58 = vsel %vm823_vm3, %v1261_v48, %v820_v56 }
 0x2c4   : > { %v835_v61 = vmul.f32 %v824_v58, %v803_v38 }
 0x2c5   : > { %v1263_v59 = vpop.eup %1262 }
 0x2c6   : > { %v826_v62 = vmul.f32 %v1263_v59, %v814_v53  ;;  %v838_v63 = vmul.f32 %v1258_v57, %v835_v61  ;;  %vm832_vm4 = vweird.f32 %v1263_v59 }
 0x2c7   : > { %vm833_vm6 = vmor %vm831_vm5, %vm832_vm4 }
 0x2c8   : > { %v827_v0 = vmul.f32 %v1263_v59, %v826_v62  ;;  %v841_v1 = vadd.f32 %v1259_v60, %v838_v63 }
 0x2ca   : > { %v828_v2 = vmul.f32 0.5, %v827_v0  ;;  %843 = vst [vmem:[%s351_s13] sm:$0xff] %v841_v1 }
 0x2cc   : > { %v829_v3 = vsub.f32 1.5, %v828_v2 }
 0x2ce   : > { %v830_v4 = vmul.f32 %v1263_v59, %v829_v3 }
 0x2d0   : > { %v834_v5 = vsel %vm833_vm6, %v1263_v59, %v830_v4 }
 0x2d1   : > { %v836_v6 = vmul.f32 %v834_v5, %v804_v43 }
 0x2d3   : > { %v839_v7 = vmul.f32 %v1258_v57, %v836_v6 }
 0x2d5   : > { %v842_v8 = vadd.f32 %v1259_v60, %v839_v7 }
 0x2d7   : > { %844 = vst [vmem:[%s351_s13 + $0x8] sm:$0xff] %v842_v8 }
 0x2d8   : > { %1441 = shalt.err (!%p1438_p10)
}
 0x2d9   : > { %s1555_s7 = smov 128   ;;  %s1556_s6 = smov 8  }
 0x2da   : > { %1130 = dma.vmem_to_hbm [thread:$0]  (%p1734_p13), %s861_s4, 256, %s863_s19, %s846_s11, %s1555_s7, %s1555_s7, %s1556_s6  }
 0x2db PF: > { %s1938_s16 = sld [smem:[#allocation17_spill]]  ;;  %p1160_p11 = scmp.ge.s32.totalorder %s1548_s28, 2 }
 0x2dd   : > { %p1150_p3 = pnand %p1160_p11, %p1657_p6 }
 0x2df   : > { %p1151_p2 = pneg %p1150_p3 }
 0x2e1   : > { %s877_s13 = sand.u32 1, %s1938_s16  }
 0x2e2   : > { %s878_s30 = scalar_lea.sflag [#allocation4], %s877_s13 }
 0x2e3   : > { %1503 = dma.done.wait (%p1151_p2), %s878_s30, 256  }
 0x2e4   : > { %1505 = vsyncadd (%p1151_p2), %s878_s30, 4294967040  ;;  %s25_s28 = sadd.s32 1, %s1548_s28   ;;  %s1940_s3 = sld [smem:[#allocation18_spill]] }
 0x2e5   : > { %p22_p12 = scmp.ge.s32.totalorder %s25_s28, 6   ;;  %s1941_s8 = smov %s1756_s18 }
 0x2e6   : > { %s1942_s24 = sld [smem:[#allocation21_spill]]  ;;  %s1945_s19 = smov %s1516_s20 }
 0x2e7   : > { %s1943_s26 = sld [smem:[#allocation25_spill]]  ;;  %s1946_s20 = smov %s1941_s8 }
 0x2e8   : > { %s1947_s21 = smov %s1524_s22  ;;  %s1948_s22 = smov %s1528_s23 }
 0x2e9   : > { %s1949_s23 = smov %s1753_s5  ;;  %s1950_s25 = smov %s1544_s27 }
 0x2ea   : > { %s1944_s18 = smov %s1940_s3  ;;  %s1951_s27 = smov %s1957_s9 }
 0x2eb   :  { %24 = sbr.rel (!%p22_p12) target bundleno = 18 (0x12), region = 119 }
 0x2f0   :  { %884 = vsyncpa [#allocation3], 1 }
 0x2f1   :  { %886 = vsyncpa [#allocation3 + $0x1], 1 }
 0x2f2   :  { %887 = vsyncpa [#allocation6], 1 }
 0x2f3   :  { %889 = vsyncpa [#allocation6 + $0x1], 1 }
 0x2f4   :  { %890 = vsyncpa [#allocation9], 1 }
 0x2f5   :  { %891 = vsyncpa [#allocation4], 1 }
 0x2f6   :  { %893 = vsyncpa [#allocation4 + $0x1], 1 }

</bundles_post_ra>
